<compile_context>
chip_gen: v6e
topology: v6e:2x2x1
jax: 0.10.0
libtpu: 0.0.40
codegen_flags: <defaults>
</compile_context>

<pallas_src>
import jax
import jax.numpy as jnp
from jax.experimental import pallas as pl
from jax.experimental.pallas import tpu as pltpu


# ----------------------------------------------------------------------------
# Encoder kernel: GRU recurrence over the source sequence for one batch tile.
# Input-side gate pre-activations gi = X @ Wi + bi are precomputed for the
# whole sequence; only h @ Wh + elementwise gates run inside the time loop.
# ----------------------------------------------------------------------------
def gru_encoder_kernel(gi_ref, wh_ref, bh_ref, out_ref):
    T, Bt, H3 = gi_ref.shape
    H = H3 // 3

    def step(t, h):
        gi = gi_ref[t]                                               # (Bt, 3H)
        gh = jnp.dot(h.astype(jnp.bfloat16), wh_ref[...],
                     preferred_element_type=jnp.float32) + bh_ref[...]
        r = jax.nn.sigmoid(gi[:, 0:H] + gh[:, 0:H])
        z = jax.nn.sigmoid(gi[:, H:2 * H] + gh[:, H:2 * H])
        n = jnp.tanh(gi[:, 2 * H:3 * H] + r * gh[:, 2 * H:3 * H])
        h_new = (1.0 - z) * n + z * h
        out_ref[t] = h_new
        return h_new

    h0 = jnp.zeros((Bt, H), jnp.float32)
    jax.lax.fori_loop(0, T, step, h0, unroll=True)


def run_gru_encoder(gi_seq, wh_bf16, bh, b_tile=None):
    T, B, H3 = gi_seq.shape
    H = H3 // 3
    if b_tile is None:
        b_tile = B  # single grid step (best for single-TC v5e/v6e)
    return pl.pallas_call(
        gru_encoder_kernel,
        out_shape=jax.ShapeDtypeStruct((T, B, H), jnp.float32),
        grid=(B // b_tile,),
        in_specs=[
            pl.BlockSpec((T, b_tile, H3), lambda b: (0, b, 0)),
            pl.BlockSpec((H, H3), lambda b: (0, 0)),
            pl.BlockSpec((1, H3), lambda b: (0, 0)),
        ],
        out_specs=pl.BlockSpec((T, b_tile, H), lambda b: (0, b, 0)),
        compiler_params=pltpu.CompilerParams(
            dimension_semantics=("arbitrary",)),
    )(gi_seq, wh_bf16, bh)


# ----------------------------------------------------------------------------
# Decoder kernel: for one batch tile, loop over decode steps inside the kernel.
# Per step: additive attention over the (precomputed) projected memory and a
# GRU cell update.  The step writes [h_t, context_t]; the vocab projection is
# hoisted out of the recurrence (done afterwards as one large XLA matmul).
# ----------------------------------------------------------------------------
def attn_decoder_kernel(gi_emb_ref, memw_ref, enci_ref, maskadd_ref, h0_ref,
                        whf_ref, va_ref, wic_ref, bh_ref,
                        h_out_ref, c_out_ref):
    Td, Bt, H3 = gi_emb_ref.shape
    H = H3 // 3
    A = va_ref.shape[-1]
    va = va_ref[...]               # (1, A)  f32
    mask_add = maskadd_ref[...]    # (Bt, T) f32   additive mask (0 / -1e9)

    def step(t, h):
        # --- fused h @ [Ua | Wh]: one MXU push; 128-lane aligned slices ---
        h_all = jnp.dot(h.astype(jnp.bfloat16), whf_ref[...],
                        preferred_element_type=jnp.float32)       # (Bt, A+3H)
        h_proj = h_all[:, 0:A]                                    # (Bt, A)
        gh = h_all[:, A:A + H3] + bh_ref[...]                     # (Bt, 3H)

        # --- additive attention: score = v . tanh(Wa*mem + Ua*h) ---
        e = jnp.tanh(memw_ref[...] + h_proj[:, None, :])          # (Bt, T, A)
        scores = jnp.sum(e * va, axis=-1) + mask_add              # (Bt, T)
        scores = scores - jnp.max(scores, axis=-1, keepdims=True)
        pexp = jnp.exp(scores)
        attn = pexp * pl.reciprocal(
            jnp.sum(pexp, axis=-1, keepdims=True), approx=True)   # (Bt, T)
        # TODO(synk): for long source sequences express the context as a
        # batched MXU contraction instead of this VPU multiply + XLU reduce.
        context = jnp.sum(attn[:, :, None] * enci_ref[...], axis=1)  # (Bt, H)

        # --- GRU cell (emb @ Wi_emb + bi is precomputed outside the loop) ---
        gi = gi_emb_ref[t] + jnp.dot(context.astype(jnp.bfloat16), wic_ref[...],
                                     preferred_element_type=jnp.float32)
        r = jax.nn.sigmoid(gi[:, 0:H] + gh[:, 0:H])
        z = jax.nn.sigmoid(gi[:, H:2 * H] + gh[:, H:2 * H])
        n = jnp.tanh(gi[:, 2 * H:3 * H] + r * gh[:, 2 * H:3 * H])
        h_new = (1.0 - z) * n + z * h

        # --- write h_t and context_t; vocab projection hoisted out ---
        h_out_ref[t] = h_new
        c_out_ref[t] = context
        return h_new

    # unroll=2 keeps vreg pressure (weights + heavy body) below spill level.
    jax.lax.fori_loop(0, Td, step, h0_ref[...], unroll=2)


def run_attn_decoder(gi_emb_seq, memw, enci_bf16, mask_add, h0, p, b_tile=None):
    Td, B, H3 = gi_emb_seq.shape
    H = H3 // 3
    _, T, A = memw.shape
    if b_tile is None:
        b_tile = B  # single grid step (best for single-TC v5e/v6e)
    # Loop-invariant fused weight [Ua | Wh] built once outside the kernel.
    w_h_fused = jnp.concatenate(
        [p["ua_dec"], p["wh_dec"]], axis=1).astype(jnp.bfloat16)   # (H, A+3H)
    wfull = lambda b: (0, 0)
    return pl.pallas_call(
        attn_decoder_kernel,
        out_shape=(
            jax.ShapeDtypeStruct((Td, B, H), jnp.float32),   # hidden states
            jax.ShapeDtypeStruct((Td, B, H), jnp.float32),   # attention ctx
        ),
        grid=(B // b_tile,),
        in_specs=[
            pl.BlockSpec((Td, b_tile, H3), lambda b: (0, b, 0)),  # gi_emb
            pl.BlockSpec((b_tile, T, A), lambda b: (b, 0, 0)),    # mem @ Wa
            pl.BlockSpec((b_tile, T, H), lambda b: (b, 0, 0)),    # enc_i values
            pl.BlockSpec((b_tile, T), lambda b: (b, 0)),          # additive mask
            pl.BlockSpec((b_tile, H), lambda b: (b, 0)),          # h0
            pl.BlockSpec((H, A + H3), wfull),                     # [Ua | Wh]
            pl.BlockSpec((1, A), wfull),                          # va
            pl.BlockSpec((H, H3), wfull),                         # Wi_ctx
            pl.BlockSpec((1, H3), wfull),                         # bh
        ],
        out_specs=(
            pl.BlockSpec((Td, b_tile, H), lambda b: (0, b, 0)),
            pl.BlockSpec((Td, b_tile, H), lambda b: (0, b, 0)),
        ),
        compiler_params=pltpu.CompilerParams(
            dimension_semantics=("arbitrary",)),
    )(gi_emb_seq, memw, enci_bf16, mask_add, h0,
      w_h_fused, p["va_dec"], p["wi_ctx"].astype(jnp.bfloat16), p["bh_dec"])


# ----------------------------------------------------------------------------
# Glue: embeddings, loop-invariant precomputes, parameter init, forward().
# ----------------------------------------------------------------------------
def init_params(key, V_word, V_field, V_pos, E, Ef, Ep, H, A, V_out):
    ks = jax.random.split(key, 18)
    nrm = lambda k, s: (0.1 * jax.random.normal(k, s)).astype(jnp.float32)
    Din = E + Ef + 2 * Ep          # encoder GRU input dim
    M = H + Ef + 2 * Ep            # attention memory dim (enc_i | enc_f | enc_p)
    return dict(
        emb_word=nrm(ks[0], (V_word, E)),
        emb_field=nrm(ks[1], (V_field, Ef)),
        emb_pos=nrm(ks[2], (V_pos, Ep)),
        wi_enc=nrm(ks[3], (Din, 3 * H)),
        wh_enc=nrm(ks[4], (H, 3 * H)),
        bi_enc=nrm(ks[5], (1, 3 * H)),
        bh_enc=nrm(ks[6], (1, 3 * H)),
        wa_dec=nrm(ks[7], (M, A)),
        ua_dec=nrm(ks[8], (H, A)),
        va_dec=nrm(ks[9], (1, A)),
        wi_emb=nrm(ks[10], (E, 3 * H)),     # embedding rows of decoder Wi
        wi_ctx=nrm(ks[11], (H, 3 * H)),     # context rows of decoder Wi
        wh_dec=nrm(ks[12], (H, 3 * H)),
        bi_dec=nrm(ks[13], (1, 3 * H)),
        bh_dec=nrm(ks[14], (1, 3 * H)),
        wo_h=nrm(ks[15], (H, V_out)),       # hidden rows of output projection
        wo_c=nrm(ks[16], (H, V_out)),       # context rows of output projection
        bo_dec=nrm(ks[17], (1, V_out)),
    )


def encoder_forward(p, batch_s, batch_f, batch_pf, batch_pb, input_lengths):
    B, T = batch_s.shape
    w_emb = jnp.take(p["emb_word"], batch_s, axis=0)     # (B, T, E)
    f_emb = jnp.take(p["emb_field"], batch_f, axis=0)    # (B, T, Ef)
    pf_emb = jnp.take(p["emb_pos"], batch_pf, axis=0)    # (B, T, Ep)
    pb_emb = jnp.take(p["emb_pos"], batch_pb, axis=0)    # (B, T, Ep)
    p_emb = jnp.concatenate([pf_emb, pb_emb], axis=-1)   # (B, T, 2Ep)

    x = jnp.concatenate([w_emb, f_emb, p_emb], axis=-1)  # (B, T, Din)
    # Input-side gate pre-activations batched over the whole sequence
    # (hoisted out of the recurrent kernel): gi = x @ Wi + bi.
    gi_seq = jnp.einsum('btd,dg->tbg', x, p["wi_enc"]) + p["bi_enc"]  # (T,B,3H)
    enc_out = run_gru_encoder(gi_seq, p["wh_enc"].astype(jnp.bfloat16),
                              p["bh_enc"])                            # (T, B, H)
    encoderi = jnp.transpose(enc_out, (1, 0, 2))                      # (B, T, H)

    # Final hidden at each sequence's true last valid position
    # (matches pack_padded_sequence semantics for the returned hidden state).
    last = jnp.clip(input_lengths - 1, 0, T - 1)
    encoder_hidden = jnp.take_along_axis(
        encoderi, last[:, None, None], axis=1)[:, 0, :]               # (B, H)

    pos = jnp.arange(T, dtype=jnp.int32)[None, :]
    mask = (pos < input_lengths[:, None]).astype(jnp.float32)  # (B,T) 1 = valid
    return encoderi, f_emb, p_emb, encoder_hidden, mask


def decoder_forward(p, max_source_oov, targets, targets_id, input_ids, enc_mask,
                    encoder_hidden, encoderi, encoderf, encoderp,
                    teacher_forcing_ratio=0.0):
    # TODO(synk): pointer/copy mechanism over source OOVs (max_source_oov,
    # input_ids) and scheduled sampling (teacher_forcing_ratio) are not
    # implemented; the decoder is teacher-forced on `targets`.
    dec_emb = jnp.take(p["emb_word"], targets, axis=0)                # (B,Td,E)
    # Loop-invariant precomputes, hoisted out of the per-step kernel:
    gi_emb_seq = (jnp.einsum('bte,eg->tbg', dec_emb, p["wi_emb"])
                  + p["bi_dec"])                                      # (Td,B,3H)
    enc_mem = jnp.concatenate([encoderi, encoderf, encoderp], axis=-1)  # (B,T,M)
    memw = jnp.einsum('btm,ma->bta', enc_mem, p["wa_dec"])            # (B,T,A)
    mask_add = (1.0 - enc_mask) * (-1e9)                              # (B,T)

    h_seq, ctx_seq = run_attn_decoder(gi_emb_seq, memw,
                                      encoderi.astype(jnp.bfloat16),
                                      mask_add, encoder_hidden, p)    # (Td,B,H)x2

    # Vocab projection hoisted out of the recurrence: one full-occupancy
    # matmul over M = Td*B rows with the concatenated [Wo_h; Wo_c] weight.
    hc = jnp.concatenate([h_seq, ctx_seq], axis=-1)                   # (Td,B,2H)
    wo_full = jnp.concatenate([p["wo_h"], p["wo_c"]], axis=0)         # (2H, V)
    logits = jnp.einsum('tbk,kv->btv', hc, wo_full) + p["bo_dec"]     # (B,Td,V)
    return logits


def seq2seq_forward(p, batch_s, batch_o_s, max_source_oov, batch_f, batch_pf,
                    batch_pb, input_lengths=None, target=None, target_id=None,
                    teacher_forcing_ratio=0.0, w2fs=None, fig=False):
    encoderi, encoderf, encoderp, encoder_hidden, mask = encoder_forward(
        p, batch_s, batch_f, batch_pf, batch_pb, input_lengths)
    result = decoder_forward(p, max_source_oov, target, target_id, batch_o_s,
                             mask, encoder_hidden, encoderi, encoderf, encoderp,
                             teacher_forcing_ratio)
    return result


if __name__ == "__main__":
    key = jax.random.PRNGKey(0)
    # Lane/sublane-friendly small shapes: H=A=128, 3H=384, V=256, B=16
    # (single batch tile -> single grid step).
    B, T_src, T_dec = 16, 8, 8
    V_word, V_field, V_pos = 256, 32, 32
    E, Ef, Ep, H, A = 64, 32, 16, 128, 128
    V_out = V_word

    kp, k1, k2, k3, k4, k5 = jax.random.split(key, 6)
    params = init_params(kp, V_word, V_field, V_pos, E, Ef, Ep, H, A, V_out)

    batch_s = jax.random.randint(k1, (B, T_src), 1, V_word, dtype=jnp.int32)
    batch_f = jax.random.randint(k2, (B, T_src), 1, V_field, dtype=jnp.int32)
    batch_pf = jax.random.randint(k3, (B, T_src), 0, V_pos, dtype=jnp.int32)
    batch_pb = jax.random.randint(k4, (B, T_src), 0, V_pos, dtype=jnp.int32)
    target = jax.random.randint(k5, (B, T_dec), 1, V_word, dtype=jnp.int32)
    input_lengths = jnp.array([T_src] * (B // 2) + [T_src - 2] * (B // 2),
                              dtype=jnp.int32)
    batch_o_s = batch_s                 # source ids with OOVs (unused, see TODO)
    max_source_oov = 0

    out = seq2seq_forward(params, batch_s, batch_o_s, max_source_oov,
                          batch_f, batch_pf, batch_pb,
                          input_lengths=input_lengths, target=target,
                          target_id=target, teacher_forcing_ratio=0.0)
    out = jax.block_until_ready(out)
    assert out.shape == (B, T_dec, V_out)
    assert bool(jnp.all(jnp.isfinite(out)))
    print("KERNEL_OK")
</pallas_src>

<mosaic_0001>
module attributes {stable_mosaic.version = 11 : i64} {
  func.func @gru_encoder_kernel(%arg0: i32, %arg1: memref<8x16x384xf32, #tpu.memory_space<vmem>>, %arg2: memref<128x384xbf16, #tpu.memory_space<vmem>>, %arg3: memref<1x384xf32, #tpu.memory_space<vmem>>, %arg4: memref<8x16x128xf32, #tpu.memory_space<vmem>>) attributes {dimension_semantics = [#tpu.dimension_semantics<arbitrary>], iteration_bounds = array<i64: 1>, scalar_prefetch = 0 : i64, scratch_operands = 0 : i64, tpu.core_type = #tpu.core_type<tc>, window_params = [{transform_indices = @transform_0, window_bounds = array<i64: 8, 16, 384>}, {pipeline_mode = #tpu.pipeline_mode<synchronous>, transform_indices = @transform_1, window_bounds = array<i64: 128, 384>}, {pipeline_mode = #tpu.pipeline_mode<synchronous>, transform_indices = @transform_2, window_bounds = array<i64: 1, 384>}, {transform_indices = @transform_3, window_bounds = array<i64: 8, 16, 128>}]} {
    %cst = arith.constant 0.000000e+00 : f32
    %0 = vector.broadcast %cst : f32 to vector<16x128xf32>
    %c0_i32 = arith.constant 0 : i32
    %1 = arith.index_cast %c0_i32 : i32 to index
    %c0 = arith.constant 0 : index
    %c0_0 = arith.constant 0 : index
    %2 = vector.load %arg1[%1, %c0, %c0_0] : memref<8x16x384xf32, #tpu.memory_space<vmem>>, vector<1x16x384xf32>
    %3 = vector.shape_cast %2 : vector<1x16x384xf32> to vector<16x384xf32>
    %4 = arith.truncf %0 : vector<16x128xf32> to vector<16x128xbf16>
    %c0_1 = arith.constant 0 : index
    %c0_2 = arith.constant 0 : index
    %5 = vector.load %arg2[%c0_1, %c0_2] : memref<128x384xbf16, #tpu.memory_space<vmem>>, vector<128x384xbf16>
    %cst_3 = arith.constant dense<0.000000e+00> : vector<16x384xf32>
    %6 = tpu.matmul %4, %5, %cst_3 {dimension_numbers = #tpu.dot_dimension_numbers<[1], [0], [0], [1], [0, 0, 1, 1], [], []>} : vector<16x128xbf16>, vector<128x384xbf16>, vector<16x384xf32> -> vector<16x384xf32>
    %c0_4 = arith.constant 0 : index
    %c0_5 = arith.constant 0 : index
    %7 = vector.load %arg3[%c0_4, %c0_5] : memref<1x384xf32, #tpu.memory_space<vmem>>, vector<1x384xf32>
    %8 = vector.broadcast %7 : vector<1x384xf32> to vector<16x384xf32>
    %9 = arith.addf %6, %8 : vector<16x384xf32>
    %10 = vector.extract_strided_slice %3 {offsets = [0, 0], sizes = [16, 128], strides = [1, 1]} : vector<16x384xf32> to vector<16x128xf32>
    %11 = vector.extract_strided_slice %9 {offsets = [0, 0], sizes = [16, 128], strides = [1, 1]} : vector<16x384xf32> to vector<16x128xf32>
    %12 = arith.addf %10, %11 : vector<16x128xf32>
    %13 = arith.negf %12 : vector<16x128xf32>
    %14 = math.exp %13 : vector<16x128xf32>
    %cst_6 = arith.constant 1.000000e+00 : f32
    %15 = vector.broadcast %cst_6 : f32 to vector<16x128xf32>
    %16 = arith.addf %15, %14 : vector<16x128xf32>
    %17 = arith.divf %15, %16 : vector<16x128xf32>
    %18 = vector.extract_strided_slice %3 {offsets = [0, 128], sizes = [16, 128], strides = [1, 1]} : vector<16x384xf32> to vector<16x128xf32>
    %19 = vector.extract_strided_slice %9 {offsets = [0, 128], sizes = [16, 128], strides = [1, 1]} : vector<16x384xf32> to vector<16x128xf32>
    %20 = arith.addf %18, %19 : vector<16x128xf32>
    %21 = arith.negf %20 : vector<16x128xf32>
    %22 = math.exp %21 : vector<16x128xf32>
    %cst_7 = arith.constant 1.000000e+00 : f32
    %23 = vector.broadcast %cst_7 : f32 to vector<16x128xf32>
    %24 = arith.addf %23, %22 : vector<16x128xf32>
    %25 = arith.divf %23, %24 : vector<16x128xf32>
    %26 = vector.extract_strided_slice %3 {offsets = [0, 256], sizes = [16, 128], strides = [1, 1]} : vector<16x384xf32> to vector<16x128xf32>
    %27 = vector.extract_strided_slice %9 {offsets = [0, 256], sizes = [16, 128], strides = [1, 1]} : vector<16x384xf32> to vector<16x128xf32>
    %28 = arith.mulf %17, %27 : vector<16x128xf32>
    %29 = arith.addf %26, %28 : vector<16x128xf32>
    %30 = math.tanh %29 : vector<16x128xf32>
    %cst_8 = arith.constant 1.000000e+00 : f32
    %31 = vector.broadcast %cst_8 : f32 to vector<16x128xf32>
    %32 = arith.subf %31, %25 : vector<16x128xf32>
    %33 = arith.mulf %32, %30 : vector<16x128xf32>
    %34 = arith.mulf %25, %0 : vector<16x128xf32>
    %35 = arith.addf %33, %34 : vector<16x128xf32>
    %36 = arith.index_cast %c0_i32 : i32 to index
    %c0_9 = arith.constant 0 : index
    %c0_10 = arith.constant 0 : index
    %37 = vector.load %arg4[%36, %c0_9, %c0_10] : memref<8x16x128xf32, #tpu.memory_space<vmem>>, vector<1x16x128xf32>
    %38 = vector.shape_cast %37 : vector<1x16x128xf32> to vector<16x128xf32>
    %39 = vector.shape_cast %35 : vector<16x128xf32> to vector<1x16x128xf32>
    tpu.vector_store %arg4[%36, %c0_9, %c0_10], %39 {strides = array<i32>} : memref<8x16x128xf32, #tpu.memory_space<vmem>>, vector<1x16x128xf32>,
    %c1_i32 = arith.constant 1 : i32
    %40 = arith.index_cast %c1_i32 : i32 to index
    %c0_11 = arith.constant 0 : index
    %c0_12 = arith.constant 0 : index
    %41 = vector.load %arg1[%40, %c0_11, %c0_12] : memref<8x16x384xf32, #tpu.memory_space<vmem>>, vector<1x16x384xf32>
    %42 = vector.shape_cast %41 : vector<1x16x384xf32> to vector<16x384xf32>
    %43 = arith.truncf %35 : vector<16x128xf32> to vector<16x128xbf16>
    %c0_13 = arith.constant 0 : index
    %c0_14 = arith.constant 0 : index
    %44 = vector.load %arg2[%c0_13, %c0_14] : memref<128x384xbf16, #tpu.memory_space<vmem>>, vector<128x384xbf16>
    %cst_15 = arith.constant dense<0.000000e+00> : vector<16x384xf32>
    %45 = tpu.matmul %43, %44, %cst_15 {dimension_numbers = #tpu.dot_dimension_numbers<[1], [0], [0], [1], [0, 0, 1, 1], [], []>} : vector<16x128xbf16>, vector<128x384xbf16>, vector<16x384xf32> -> vector<16x384xf32>
    %c0_16 = arith.constant 0 : index
    %c0_17 = arith.constant 0 : index
    %46 = vector.load %arg3[%c0_16, %c0_17] : memref<1x384xf32, #tpu.memory_space<vmem>>, vector<1x384xf32>
    %47 = vector.broadcast %46 : vector<1x384xf32> to vector<16x384xf32>
    %48 = arith.addf %45, %47 : vector<16x384xf32>
    %49 = vector.extract_strided_slice %42 {offsets = [0, 0], sizes = [16, 128], strides = [1, 1]} : vector<16x384xf32> to vector<16x128xf32>
    %50 = vector.extract_strided_slice %48 {offsets = [0, 0], sizes = [16, 128], strides = [1, 1]} : vector<16x384xf32> to vector<16x128xf32>
    %51 = arith.addf %49, %50 : vector<16x128xf32>
    %52 = arith.negf %51 : vector<16x128xf32>
    %53 = math.exp %52 : vector<16x128xf32>
    %cst_18 = arith.constant 1.000000e+00 : f32
    %54 = vector.broadcast %cst_18 : f32 to vector<16x128xf32>
    %55 = arith.addf %54, %53 : vector<16x128xf32>
    %56 = arith.divf %54, %55 : vector<16x128xf32>
    %57 = vector.extract_strided_slice %42 {offsets = [0, 128], sizes = [16, 128], strides = [1, 1]} : vector<16x384xf32> to vector<16x128xf32>
    %58 = vector.extract_strided_slice %48 {offsets = [0, 128], sizes = [16, 128], strides = [1, 1]} : vector<16x384xf32> to vector<16x128xf32>
    %59 = arith.addf %57, %58 : vector<16x128xf32>
    %60 = arith.negf %59 : vector<16x128xf32>
    %61 = math.exp %60 : vector<16x128xf32>
    %cst_19 = arith.constant 1.000000e+00 : f32
    %62 = vector.broadcast %cst_19 : f32 to vector<16x128xf32>
    %63 = arith.addf %62, %61 : vector<16x128xf32>
    %64 = arith.divf %62, %63 : vector<16x128xf32>
    %65 = vector.extract_strided_slice %42 {offsets = [0, 256], sizes = [16, 128], strides = [1, 1]} : vector<16x384xf32> to vector<16x128xf32>
    %66 = vector.extract_strided_slice %48 {offsets = [0, 256], sizes = [16, 128], strides = [1, 1]} : vector<16x384xf32> to vector<16x128xf32>
    %67 = arith.mulf %56, %66 : vector<16x128xf32>
    %68 = arith.addf %65, %67 : vector<16x128xf32>
    %69 = math.tanh %68 : vector<16x128xf32>
    %cst_20 = arith.constant 1.000000e+00 : f32
    %70 = vector.broadcast %cst_20 : f32 to vector<16x128xf32>
    %71 = arith.subf %70, %64 : vector<16x128xf32>
    %72 = arith.mulf %71, %69 : vector<16x128xf32>
    %73 = arith.mulf %64, %35 : vector<16x128xf32>
    %74 = arith.addf %72, %73 : vector<16x128xf32>
    %75 = arith.index_cast %c1_i32 : i32 to index
    %c0_21 = arith.constant 0 : index
    %c0_22 = arith.constant 0 : index
    %76 = vector.load %arg4[%75, %c0_21, %c0_22] : memref<8x16x128xf32, #tpu.memory_space<vmem>>, vector<1x16x128xf32>
    %77 = vector.shape_cast %76 : vector<1x16x128xf32> to vector<16x128xf32>
    %78 = vector.shape_cast %74 : vector<16x128xf32> to vector<1x16x128xf32>
    tpu.vector_store %arg4[%75, %c0_21, %c0_22], %78 {strides = array<i32>} : memref<8x16x128xf32, #tpu.memory_space<vmem>>, vector<1x16x128xf32>,
    %c2_i32 = arith.constant 2 : i32
    %79 = arith.index_cast %c2_i32 : i32 to index
    %c0_23 = arith.constant 0 : index
    %c0_24 = arith.constant 0 : index
    %80 = vector.load %arg1[%79, %c0_23, %c0_24] : memref<8x16x384xf32, #tpu.memory_space<vmem>>, vector<1x16x384xf32>
    %81 = vector.shape_cast %80 : vector<1x16x384xf32> to vector<16x384xf32>
    %82 = arith.truncf %74 : vector<16x128xf32> to vector<16x128xbf16>
    %c0_25 = arith.constant 0 : index
    %c0_26 = arith.constant 0 : index
    %83 = vector.load %arg2[%c0_25, %c0_26] : memref<128x384xbf16, #tpu.memory_space<vmem>>, vector<128x384xbf16>
    %cst_27 = arith.constant dense<0.000000e+00> : vector<16x384xf32>
    %84 = tpu.matmul %82, %83, %cst_27 {dimension_numbers = #tpu.dot_dimension_numbers<[1], [0], [0], [1], [0, 0, 1, 1], [], []>} : vector<16x128xbf16>, vector<128x384xbf16>, vector<16x384xf32> -> vector<16x384xf32>
    %c0_28 = arith.constant 0 : index
    %c0_29 = arith.constant 0 : index
    %85 = vector.load %arg3[%c0_28, %c0_29] : memref<1x384xf32, #tpu.memory_space<vmem>>, vector<1x384xf32>
    %86 = vector.broadcast %85 : vector<1x384xf32> to vector<16x384xf32>
    %87 = arith.addf %84, %86 : vector<16x384xf32>
    %88 = vector.extract_strided_slice %81 {offsets = [0, 0], sizes = [16, 128], strides = [1, 1]} : vector<16x384xf32> to vector<16x128xf32>
    %89 = vector.extract_strided_slice %87 {offsets = [0, 0], sizes = [16, 128], strides = [1, 1]} : vector<16x384xf32> to vector<16x128xf32>
    %90 = arith.addf %88, %89 : vector<16x128xf32>
    %91 = arith.negf %90 : vector<16x128xf32>
    %92 = math.exp %91 : vector<16x128xf32>
    %cst_30 = arith.constant 1.000000e+00 : f32
    %93 = vector.broadcast %cst_30 : f32 to vector<16x128xf32>
    %94 = arith.addf %93, %92 : vector<16x128xf32>
    %95 = arith.divf %93, %94 : vector<16x128xf32>
    %96 = vector.extract_strided_slice %81 {offsets = [0, 128], sizes = [16, 128], strides = [1, 1]} : vector<16x384xf32> to vector<16x128xf32>
    %97 = vector.extract_strided_slice %87 {offsets = [0, 128], sizes = [16, 128], strides = [1, 1]} : vector<16x384xf32> to vector<16x128xf32>
    %98 = arith.addf %96, %97 : vector<16x128xf32>
    %99 = arith.negf %98 : vector<16x128xf32>
    %100 = math.exp %99 : vector<16x128xf32>
    %cst_31 = arith.constant 1.000000e+00 : f32
    %101 = vector.broadcast %cst_31 : f32 to vector<16x128xf32>
    %102 = arith.addf %101, %100 : vector<16x128xf32>
    %103 = arith.divf %101, %102 : vector<16x128xf32>
    %104 = vector.extract_strided_slice %81 {offsets = [0, 256], sizes = [16, 128], strides = [1, 1]} : vector<16x384xf32> to vector<16x128xf32>
    %105 = vector.extract_strided_slice %87 {offsets = [0, 256], sizes = [16, 128], strides = [1, 1]} : vector<16x384xf32> to vector<16x128xf32>
    %106 = arith.mulf %95, %105 : vector<16x128xf32>
    %107 = arith.addf %104, %106 : vector<16x128xf32>
    %108 = math.tanh %107 : vector<16x128xf32>
    %cst_32 = arith.constant 1.000000e+00 : f32
    %109 = vector.broadcast %cst_32 : f32 to vector<16x128xf32>
    %110 = arith.subf %109, %103 : vector<16x128xf32>
    %111 = arith.mulf %110, %108 : vector<16x128xf32>
    %112 = arith.mulf %103, %74 : vector<16x128xf32>
    %113 = arith.addf %111, %112 : vector<16x128xf32>
    %114 = arith.index_cast %c2_i32 : i32 to index
    %c0_33 = arith.constant 0 : index
    %c0_34 = arith.constant 0 : index
    %115 = vector.load %arg4[%114, %c0_33, %c0_34] : memref<8x16x128xf32, #tpu.memory_space<vmem>>, vector<1x16x128xf32>
    %116 = vector.shape_cast %115 : vector<1x16x128xf32> to vector<16x128xf32>
    %117 = vector.shape_cast %113 : vector<16x128xf32> to vector<1x16x128xf32>
    tpu.vector_store %arg4[%114, %c0_33, %c0_34], %117 {strides = array<i32>} : memref<8x16x128xf32, #tpu.memory_space<vmem>>, vector<1x16x128xf32>,
    %c3_i32 = arith.constant 3 : i32
    %118 = arith.index_cast %c3_i32 : i32 to index
    %c0_35 = arith.constant 0 : index
    %c0_36 = arith.constant 0 : index
    %119 = vector.load %arg1[%118, %c0_35, %c0_36] : memref<8x16x384xf32, #tpu.memory_space<vmem>>, vector<1x16x384xf32>
    %120 = vector.shape_cast %119 : vector<1x16x384xf32> to vector<16x384xf32>
    %121 = arith.truncf %113 : vector<16x128xf32> to vector<16x128xbf16>
    %c0_37 = arith.constant 0 : index
    %c0_38 = arith.constant 0 : index
    %122 = vector.load %arg2[%c0_37, %c0_38] : memref<128x384xbf16, #tpu.memory_space<vmem>>, vector<128x384xbf16>
    %cst_39 = arith.constant dense<0.000000e+00> : vector<16x384xf32>
    %123 = tpu.matmul %121, %122, %cst_39 {dimension_numbers = #tpu.dot_dimension_numbers<[1], [0], [0], [1], [0, 0, 1, 1], [], []>} : vector<16x128xbf16>, vector<128x384xbf16>, vector<16x384xf32> -> vector<16x384xf32>
    %c0_40 = arith.constant 0 : index
    %c0_41 = arith.constant 0 : index
    %124 = vector.load %arg3[%c0_40, %c0_41] : memref<1x384xf32, #tpu.memory_space<vmem>>, vector<1x384xf32>
    %125 = vector.broadcast %124 : vector<1x384xf32> to vector<16x384xf32>
    %126 = arith.addf %123, %125 : vector<16x384xf32>
    %127 = vector.extract_strided_slice %120 {offsets = [0, 0], sizes = [16, 128], strides = [1, 1]} : vector<16x384xf32> to vector<16x128xf32>
    %128 = vector.extract_strided_slice %126 {offsets = [0, 0], sizes = [16, 128], strides = [1, 1]} : vector<16x384xf32> to vector<16x128xf32>
    %129 = arith.addf %127, %128 : vector<16x128xf32>
    %130 = arith.negf %129 : vector<16x128xf32>
    %131 = math.exp %130 : vector<16x128xf32>
    %cst_42 = arith.constant 1.000000e+00 : f32
    %132 = vector.broadcast %cst_42 : f32 to vector<16x128xf32>
    %133 = arith.addf %132, %131 : vector<16x128xf32>
    %134 = arith.divf %132, %133 : vector<16x128xf32>
    %135 = vector.extract_strided_slice %120 {offsets = [0, 128], sizes = [16, 128], strides = [1, 1]} : vector<16x384xf32> to vector<16x128xf32>
    %136 = vector.extract_strided_slice %126 {offsets = [0, 128], sizes = [16, 128], strides = [1, 1]} : vector<16x384xf32> to vector<16x128xf32>
    %137 = arith.addf %135, %136 : vector<16x128xf32>
    %138 = arith.negf %137 : vector<16x128xf32>
    %139 = math.exp %138 : vector<16x128xf32>
    %cst_43 = arith.constant 1.000000e+00 : f32
    %140 = vector.broadcast %cst_43 : f32 to vector<16x128xf32>
    %141 = arith.addf %140, %139 : vector<16x128xf32>
    %142 = arith.divf %140, %141 : vector<16x128xf32>
    %143 = vector.extract_strided_slice %120 {offsets = [0, 256], sizes = [16, 128], strides = [1, 1]} : vector<16x384xf32> to vector<16x128xf32>
    %144 = vector.extract_strided_slice %126 {offsets = [0, 256], sizes = [16, 128], strides = [1, 1]} : vector<16x384xf32> to vector<16x128xf32>
    %145 = arith.mulf %134, %144 : vector<16x128xf32>
    %146 = arith.addf %143, %145 : vector<16x128xf32>
    %147 = math.tanh %146 : vector<16x128xf32>
    %cst_44 = arith.constant 1.000000e+00 : f32
    %148 = vector.broadcast %cst_44 : f32 to vector<16x128xf32>
    %149 = arith.subf %148, %142 : vector<16x128xf32>
    %150 = arith.mulf %149, %147 : vector<16x128xf32>
    %151 = arith.mulf %142, %113 : vector<16x128xf32>
    %152 = arith.addf %150, %151 : vector<16x128xf32>
    %153 = arith.index_cast %c3_i32 : i32 to index
    %c0_45 = arith.constant 0 : index
    %c0_46 = arith.constant 0 : index
    %154 = vector.load %arg4[%153, %c0_45, %c0_46] : memref<8x16x128xf32, #tpu.memory_space<vmem>>, vector<1x16x128xf32>
    %155 = vector.shape_cast %154 : vector<1x16x128xf32> to vector<16x128xf32>
    %156 = vector.shape_cast %152 : vector<16x128xf32> to vector<1x16x128xf32>
    tpu.vector_store %arg4[%153, %c0_45, %c0_46], %156 {strides = array<i32>} : memref<8x16x128xf32, #tpu.memory_space<vmem>>, vector<1x16x128xf32>,
    %c4_i32 = arith.constant 4 : i32
    %157 = arith.index_cast %c4_i32 : i32 to index
    %c0_47 = arith.constant 0 : index
    %c0_48 = arith.constant 0 : index
    %158 = vector.load %arg1[%157, %c0_47, %c0_48] : memref<8x16x384xf32, #tpu.memory_space<vmem>>, vector<1x16x384xf32>
    %159 = vector.shape_cast %158 : vector<1x16x384xf32> to vector<16x384xf32>
    %160 = arith.truncf %152 : vector<16x128xf32> to vector<16x128xbf16>
    %c0_49 = arith.constant 0 : index
    %c0_50 = arith.constant 0 : index
    %161 = vector.load %arg2[%c0_49, %c0_50] : memref<128x384xbf16, #tpu.memory_space<vmem>>, vector<128x384xbf16>
    %cst_51 = arith.constant dense<0.000000e+00> : vector<16x384xf32>
    %162 = tpu.matmul %160, %161, %cst_51 {dimension_numbers = #tpu.dot_dimension_numbers<[1], [0], [0], [1], [0, 0, 1, 1], [], []>} : vector<16x128xbf16>, vector<128x384xbf16>, vector<16x384xf32> -> vector<16x384xf32>
    %c0_52 = arith.constant 0 : index
    %c0_53 = arith.constant 0 : index
    %163 = vector.load %arg3[%c0_52, %c0_53] : memref<1x384xf32, #tpu.memory_space<vmem>>, vector<1x384xf32>
    %164 = vector.broadcast %163 : vector<1x384xf32> to vector<16x384xf32>
    %165 = arith.addf %162, %164 : vector<16x384xf32>
    %166 = vector.extract_strided_slice %159 {offsets = [0, 0], sizes = [16, 128], strides = [1, 1]} : vector<16x384xf32> to vector<16x128xf32>
    %167 = vector.extract_strided_slice %165 {offsets = [0, 0], sizes = [16, 128], strides = [1, 1]} : vector<16x384xf32> to vector<16x128xf32>
    %168 = arith.addf %166, %167 : vector<16x128xf32>
    %169 = arith.negf %168 : vector<16x128xf32>
    %170 = math.exp %169 : vector<16x128xf32>
    %cst_54 = arith.constant 1.000000e+00 : f32
    %171 = vector.broadcast %cst_54 : f32 to vector<16x128xf32>
    %172 = arith.addf %171, %170 : vector<16x128xf32>
    %173 = arith.divf %171, %172 : vector<16x128xf32>
    %174 = vector.extract_strided_slice %159 {offsets = [0, 128], sizes = [16, 128], strides = [1, 1]} : vector<16x384xf32> to vector<16x128xf32>
    %175 = vector.extract_strided_slice %165 {offsets = [0, 128], sizes = [16, 128], strides = [1, 1]} : vector<16x384xf32> to vector<16x128xf32>
    %176 = arith.addf %174, %175 : vector<16x128xf32>
    %177 = arith.negf %176 : vector<16x128xf32>
    %178 = math.exp %177 : vector<16x128xf32>
    %cst_55 = arith.constant 1.000000e+00 : f32
    %179 = vector.broadcast %cst_55 : f32 to vector<16x128xf32>
    %180 = arith.addf %179, %178 : vector<16x128xf32>
    %181 = arith.divf %179, %180 : vector<16x128xf32>
    %182 = vector.extract_strided_slice %159 {offsets = [0, 256], sizes = [16, 128], strides = [1, 1]} : vector<16x384xf32> to vector<16x128xf32>
    %183 = vector.extract_strided_slice %165 {offsets = [0, 256], sizes = [16, 128], strides = [1, 1]} : vector<16x384xf32> to vector<16x128xf32>
    %184 = arith.mulf %173, %183 : vector<16x128xf32>
    %185 = arith.addf %182, %184 : vector<16x128xf32>
    %186 = math.tanh %185 : vector<16x128xf32>
    %cst_56 = arith.constant 1.000000e+00 : f32
    %187 = vector.broadcast %cst_56 : f32 to vector<16x128xf32>
    %188 = arith.subf %187, %181 : vector<16x128xf32>
    %189 = arith.mulf %188, %186 : vector<16x128xf32>
    %190 = arith.mulf %181, %152 : vector<16x128xf32>
    %191 = arith.addf %189, %190 : vector<16x128xf32>
    %192 = arith.index_cast %c4_i32 : i32 to index
    %c0_57 = arith.constant 0 : index
    %c0_58 = arith.constant 0 : index
    %193 = vector.load %arg4[%192, %c0_57, %c0_58] : memref<8x16x128xf32, #tpu.memory_space<vmem>>, vector<1x16x128xf32>
    %194 = vector.shape_cast %193 : vector<1x16x128xf32> to vector<16x128xf32>
    %195 = vector.shape_cast %191 : vector<16x128xf32> to vector<1x16x128xf32>
    tpu.vector_store %arg4[%192, %c0_57, %c0_58], %195 {strides = array<i32>} : memref<8x16x128xf32, #tpu.memory_space<vmem>>, vector<1x16x128xf32>,
    %c5_i32 = arith.constant 5 : i32
    %196 = arith.index_cast %c5_i32 : i32 to index
    %c0_59 = arith.constant 0 : index
    %c0_60 = arith.constant 0 : index
    %197 = vector.load %arg1[%196, %c0_59, %c0_60] : memref<8x16x384xf32, #tpu.memory_space<vmem>>, vector<1x16x384xf32>
    %198 = vector.shape_cast %197 : vector<1x16x384xf32> to vector<16x384xf32>
    %199 = arith.truncf %191 : vector<16x128xf32> to vector<16x128xbf16>
    %c0_61 = arith.constant 0 : index
    %c0_62 = arith.constant 0 : index
    %200 = vector.load %arg2[%c0_61, %c0_62] : memref<128x384xbf16, #tpu.memory_space<vmem>>, vector<128x384xbf16>
    %cst_63 = arith.constant dense<0.000000e+00> : vector<16x384xf32>
    %201 = tpu.matmul %199, %200, %cst_63 {dimension_numbers = #tpu.dot_dimension_numbers<[1], [0], [0], [1], [0, 0, 1, 1], [], []>} : vector<16x128xbf16>, vector<128x384xbf16>, vector<16x384xf32> -> vector<16x384xf32>
    %c0_64 = arith.constant 0 : index
    %c0_65 = arith.constant 0 : index
    %202 = vector.load %arg3[%c0_64, %c0_65] : memref<1x384xf32, #tpu.memory_space<vmem>>, vector<1x384xf32>
    %203 = vector.broadcast %202 : vector<1x384xf32> to vector<16x384xf32>
    %204 = arith.addf %201, %203 : vector<16x384xf32>
    %205 = vector.extract_strided_slice %198 {offsets = [0, 0], sizes = [16, 128], strides = [1, 1]} : vector<16x384xf32> to vector<16x128xf32>
    %206 = vector.extract_strided_slice %204 {offsets = [0, 0], sizes = [16, 128], strides = [1, 1]} : vector<16x384xf32> to vector<16x128xf32>
    %207 = arith.addf %205, %206 : vector<16x128xf32>
    %208 = arith.negf %207 : vector<16x128xf32>
    %209 = math.exp %208 : vector<16x128xf32>
    %cst_66 = arith.constant 1.000000e+00 : f32
    %210 = vector.broadcast %cst_66 : f32 to vector<16x128xf32>
    %211 = arith.addf %210, %209 : vector<16x128xf32>
    %212 = arith.divf %210, %211 : vector<16x128xf32>
    %213 = vector.extract_strided_slice %198 {offsets = [0, 128], sizes = [16, 128], strides = [1, 1]} : vector<16x384xf32> to vector<16x128xf32>
    %214 = vector.extract_strided_slice %204 {offsets = [0, 128], sizes = [16, 128], strides = [1, 1]} : vector<16x384xf32> to vector<16x128xf32>
    %215 = arith.addf %213, %214 : vector<16x128xf32>
    %216 = arith.negf %215 : vector<16x128xf32>
    %217 = math.exp %216 : vector<16x128xf32>
    %cst_67 = arith.constant 1.000000e+00 : f32
    %218 = vector.broadcast %cst_67 : f32 to vector<16x128xf32>
    %219 = arith.addf %218, %217 : vector<16x128xf32>
    %220 = arith.divf %218, %219 : vector<16x128xf32>
    %221 = vector.extract_strided_slice %198 {offsets = [0, 256], sizes = [16, 128], strides = [1, 1]} : vector<16x384xf32> to vector<16x128xf32>
    %222 = vector.extract_strided_slice %204 {offsets = [0, 256], sizes = [16, 128], strides = [1, 1]} : vector<16x384xf32> to vector<16x128xf32>
    %223 = arith.mulf %212, %222 : vector<16x128xf32>
    %224 = arith.addf %221, %223 : vector<16x128xf32>
    %225 = math.tanh %224 : vector<16x128xf32>
    %cst_68 = arith.constant 1.000000e+00 : f32
    %226 = vector.broadcast %cst_68 : f32 to vector<16x128xf32>
    %227 = arith.subf %226, %220 : vector<16x128xf32>
    %228 = arith.mulf %227, %225 : vector<16x128xf32>
    %229 = arith.mulf %220, %191 : vector<16x128xf32>
    %230 = arith.addf %228, %229 : vector<16x128xf32>
    %231 = arith.index_cast %c5_i32 : i32 to index
    %c0_69 = arith.constant 0 : index
    %c0_70 = arith.constant 0 : index
    %232 = vector.load %arg4[%231, %c0_69, %c0_70] : memref<8x16x128xf32, #tpu.memory_space<vmem>>, vector<1x16x128xf32>
    %233 = vector.shape_cast %232 : vector<1x16x128xf32> to vector<16x128xf32>
    %234 = vector.shape_cast %230 : vector<16x128xf32> to vector<1x16x128xf32>
    tpu.vector_store %arg4[%231, %c0_69, %c0_70], %234 {strides = array<i32>} : memref<8x16x128xf32, #tpu.memory_space<vmem>>, vector<1x16x128xf32>,
    %c6_i32 = arith.constant 6 : i32
    %235 = arith.index_cast %c6_i32 : i32 to index
    %c0_71 = arith.constant 0 : index
    %c0_72 = arith.constant 0 : index
    %236 = vector.load %arg1[%235, %c0_71, %c0_72] : memref<8x16x384xf32, #tpu.memory_space<vmem>>, vector<1x16x384xf32>
    %237 = vector.shape_cast %236 : vector<1x16x384xf32> to vector<16x384xf32>
    %238 = arith.truncf %230 : vector<16x128xf32> to vector<16x128xbf16>
    %c0_73 = arith.constant 0 : index
    %c0_74 = arith.constant 0 : index
    %239 = vector.load %arg2[%c0_73, %c0_74] : memref<128x384xbf16, #tpu.memory_space<vmem>>, vector<128x384xbf16>
    %cst_75 = arith.constant dense<0.000000e+00> : vector<16x384xf32>
    %240 = tpu.matmul %238, %239, %cst_75 {dimension_numbers = #tpu.dot_dimension_numbers<[1], [0], [0], [1], [0, 0, 1, 1], [], []>} : vector<16x128xbf16>, vector<128x384xbf16>, vector<16x384xf32> -> vector<16x384xf32>
    %c0_76 = arith.constant 0 : index
    %c0_77 = arith.constant 0 : index
    %241 = vector.load %arg3[%c0_76, %c0_77] : memref<1x384xf32, #tpu.memory_space<vmem>>, vector<1x384xf32>
    %242 = vector.broadcast %241 : vector<1x384xf32> to vector<16x384xf32>
    %243 = arith.addf %240, %242 : vector<16x384xf32>
    %244 = vector.extract_strided_slice %237 {offsets = [0, 0], sizes = [16, 128], strides = [1, 1]} : vector<16x384xf32> to vector<16x128xf32>
    %245 = vector.extract_strided_slice %243 {offsets = [0, 0], sizes = [16, 128], strides = [1, 1]} : vector<16x384xf32> to vector<16x128xf32>
    %246 = arith.addf %244, %245 : vector<16x128xf32>
    %247 = arith.negf %246 : vector<16x128xf32>
    %248 = math.exp %247 : vector<16x128xf32>
    %cst_78 = arith.constant 1.000000e+00 : f32
    %249 = vector.broadcast %cst_78 : f32 to vector<16x128xf32>
    %250 = arith.addf %249, %248 : vector<16x128xf32>
    %251 = arith.divf %249, %250 : vector<16x128xf32>
    %252 = vector.extract_strided_slice %237 {offsets = [0, 128], sizes = [16, 128], strides = [1, 1]} : vector<16x384xf32> to vector<16x128xf32>
    %253 = vector.extract_strided_slice %243 {offsets = [0, 128], sizes = [16, 128], strides = [1, 1]} : vector<16x384xf32> to vector<16x128xf32>
    %254 = arith.addf %252, %253 : vector<16x128xf32>
    %255 = arith.negf %254 : vector<16x128xf32>
    %256 = math.exp %255 : vector<16x128xf32>
    %cst_79 = arith.constant 1.000000e+00 : f32
    %257 = vector.broadcast %cst_79 : f32 to vector<16x128xf32>
    %258 = arith.addf %257, %256 : vector<16x128xf32>
    %259 = arith.divf %257, %258 : vector<16x128xf32>
    %260 = vector.extract_strided_slice %237 {offsets = [0, 256], sizes = [16, 128], strides = [1, 1]} : vector<16x384xf32> to vector<16x128xf32>
    %261 = vector.extract_strided_slice %243 {offsets = [0, 256], sizes = [16, 128], strides = [1, 1]} : vector<16x384xf32> to vector<16x128xf32>
    %262 = arith.mulf %251, %261 : vector<16x128xf32>
    %263 = arith.addf %260, %262 : vector<16x128xf32>
    %264 = math.tanh %263 : vector<16x128xf32>
    %cst_80 = arith.constant 1.000000e+00 : f32
    %265 = vector.broadcast %cst_80 : f32 to vector<16x128xf32>
    %266 = arith.subf %265, %259 : vector<16x128xf32>
    %267 = arith.mulf %266, %264 : vector<16x128xf32>
    %268 = arith.mulf %259, %230 : vector<16x128xf32>
    %269 = arith.addf %267, %268 : vector<16x128xf32>
    %270 = arith.index_cast %c6_i32 : i32 to index
    %c0_81 = arith.constant 0 : index
    %c0_82 = arith.constant 0 : index
    %271 = vector.load %arg4[%270, %c0_81, %c0_82] : memref<8x16x128xf32, #tpu.memory_space<vmem>>, vector<1x16x128xf32>
    %272 = vector.shape_cast %271 : vector<1x16x128xf32> to vector<16x128xf32>
    %273 = vector.shape_cast %269 : vector<16x128xf32> to vector<1x16x128xf32>
    tpu.vector_store %arg4[%270, %c0_81, %c0_82], %273 {strides = array<i32>} : memref<8x16x128xf32, #tpu.memory_space<vmem>>, vector<1x16x128xf32>,
    %c7_i32 = arith.constant 7 : i32
    %274 = arith.index_cast %c7_i32 : i32 to index
    %c0_83 = arith.constant 0 : index
    %c0_84 = arith.constant 0 : index
    %275 = vector.load %arg1[%274, %c0_83, %c0_84] : memref<8x16x384xf32, #tpu.memory_space<vmem>>, vector<1x16x384xf32>
    %276 = vector.shape_cast %275 : vector<1x16x384xf32> to vector<16x384xf32>
    %277 = arith.truncf %269 : vector<16x128xf32> to vector<16x128xbf16>
    %c0_85 = arith.constant 0 : index
    %c0_86 = arith.constant 0 : index
    %278 = vector.load %arg2[%c0_85, %c0_86] : memref<128x384xbf16, #tpu.memory_space<vmem>>, vector<128x384xbf16>
    %cst_87 = arith.constant dense<0.000000e+00> : vector<16x384xf32>
    %279 = tpu.matmul %277, %278, %cst_87 {dimension_numbers = #tpu.dot_dimension_numbers<[1], [0], [0], [1], [0, 0, 1, 1], [], []>} : vector<16x128xbf16>, vector<128x384xbf16>, vector<16x384xf32> -> vector<16x384xf32>
    %c0_88 = arith.constant 0 : index
    %c0_89 = arith.constant 0 : index
    %280 = vector.load %arg3[%c0_88, %c0_89] : memref<1x384xf32, #tpu.memory_space<vmem>>, vector<1x384xf32>
    %281 = vector.broadcast %280 : vector<1x384xf32> to vector<16x384xf32>
    %282 = arith.addf %279, %281 : vector<16x384xf32>
    %283 = vector.extract_strided_slice %276 {offsets = [0, 0], sizes = [16, 128], strides = [1, 1]} : vector<16x384xf32> to vector<16x128xf32>
    %284 = vector.extract_strided_slice %282 {offsets = [0, 0], sizes = [16, 128], strides = [1, 1]} : vector<16x384xf32> to vector<16x128xf32>
    %285 = arith.addf %283, %284 : vector<16x128xf32>
    %286 = arith.negf %285 : vector<16x128xf32>
    %287 = math.exp %286 : vector<16x128xf32>
    %cst_90 = arith.constant 1.000000e+00 : f32
    %288 = vector.broadcast %cst_90 : f32 to vector<16x128xf32>
    %289 = arith.addf %288, %287 : vector<16x128xf32>
    %290 = arith.divf %288, %289 : vector<16x128xf32>
    %291 = vector.extract_strided_slice %276 {offsets = [0, 128], sizes = [16, 128], strides = [1, 1]} : vector<16x384xf32> to vector<16x128xf32>
    %292 = vector.extract_strided_slice %282 {offsets = [0, 128], sizes = [16, 128], strides = [1, 1]} : vector<16x384xf32> to vector<16x128xf32>
    %293 = arith.addf %291, %292 : vector<16x128xf32>
    %294 = arith.negf %293 : vector<16x128xf32>
    %295 = math.exp %294 : vector<16x128xf32>
    %cst_91 = arith.constant 1.000000e+00 : f32
    %296 = vector.broadcast %cst_91 : f32 to vector<16x128xf32>
    %297 = arith.addf %296, %295 : vector<16x128xf32>
    %298 = arith.divf %296, %297 : vector<16x128xf32>
    %299 = vector.extract_strided_slice %276 {offsets = [0, 256], sizes = [16, 128], strides = [1, 1]} : vector<16x384xf32> to vector<16x128xf32>
    %300 = vector.extract_strided_slice %282 {offsets = [0, 256], sizes = [16, 128], strides = [1, 1]} : vector<16x384xf32> to vector<16x128xf32>
    %301 = arith.mulf %290, %300 : vector<16x128xf32>
    %302 = arith.addf %299, %301 : vector<16x128xf32>
    %303 = math.tanh %302 : vector<16x128xf32>
    %cst_92 = arith.constant 1.000000e+00 : f32
    %304 = vector.broadcast %cst_92 : f32 to vector<16x128xf32>
    %305 = arith.subf %304, %298 : vector<16x128xf32>
    %306 = arith.mulf %305, %303 : vector<16x128xf32>
    %307 = arith.mulf %298, %269 : vector<16x128xf32>
    %308 = arith.addf %306, %307 : vector<16x128xf32>
    %309 = arith.index_cast %c7_i32 : i32 to index
    %c0_93 = arith.constant 0 : index
    %c0_94 = arith.constant 0 : index
    %310 = vector.load %arg4[%309, %c0_93, %c0_94] : memref<8x16x128xf32, #tpu.memory_space<vmem>>, vector<1x16x128xf32>
    %311 = vector.shape_cast %310 : vector<1x16x128xf32> to vector<16x128xf32>
    %312 = vector.shape_cast %308 : vector<16x128xf32> to vector<1x16x128xf32>
    tpu.vector_store %arg4[%309, %c0_93, %c0_94], %312 {strides = array<i32>} : memref<8x16x128xf32, #tpu.memory_space<vmem>>, vector<1x16x128xf32>,
    %c8_i32 = arith.constant 8 : i32
    return
  }
  func.func @transform_0(%arg0: i32) -> (i32, i32, i32) {
    %c0_i32 = arith.constant 0 : i32
    %c0_i32_0 = arith.constant 0 : i32
    %c0_i32_1 = arith.constant 0 : i32
    return %c0_i32, %arg0, %c0_i32_0 : i32, i32, i32
  }
  func.func @transform_1(%arg0: i32) -> (i32, i32) {
    %c0_i32 = arith.constant 0 : i32
    %c0_i32_0 = arith.constant 0 : i32
    %c0_i32_1 = arith.constant 0 : i32
    return %c0_i32, %c0_i32_0 : i32, i32
  }
  func.func @transform_2(%arg0: i32) -> (i32, i32) {
    %c0_i32 = arith.constant 0 : i32
    %c0_i32_0 = arith.constant 0 : i32
    %c0_i32_1 = arith.constant 0 : i32
    return %c0_i32, %c0_i32_0 : i32, i32
  }
  func.func @transform_3(%arg0: i32) -> (i32, i32, i32) {
    %c0_i32 = arith.constant 0 : i32
    %c0_i32_0 = arith.constant 0 : i32
    %c0_i32_1 = arith.constant 0 : i32
    return %c0_i32, %arg0, %c0_i32_0 : i32, i32, i32
  }
}

</mosaic_0001>

<bundles_post_ra>
// kernel: tpu_custom_call.1
= control target key start
LH: loop header
LB: loop body
LE: loop exit
PB: predicated region body
PF: predicated region fallthrough
CT: control target
= control target key end

     0   :  { %8 = vsyncpa [#allocation3], 0  ;;  %s3824_s0 = inlined_call_operand.hbm [shape: f32[8,16,384], index: 0, kind: input, shape index: {}]   ;;  %s3825_s1 = inlined_call_operand.hbm [shape: bf16[128,384], index: 1, kind: input, shape index: {}]   ;;  %s3826_s2 = inlined_call_operand.vmem [shape: f32[1,384], index: 2, kind: input, shape index: {}]   ;;  %s3827_s3 = inlined_call_operand.hbm [shape: f32[8,16,128], index: 3, kind: output, shape index: {}]  }
   0x1   :  { %9 = vsyncpa [#allocation6], 0 }
   0x2   :  { %10 = vsyncpa [#allocation4], 0  ;;  %s3377_s12 = smov [#allocation2]  }
   0x3   :  { %s16_s13 = sshll.u32 %s3377_s12, 4  ;;  %s17_s13 = int_to_ptr.vmem [resolvable:$true] %s16_s13 }
   0x4   :  { %s3319_s14 = scalar_lea.vmem %s17_s13, 6144  ;;  %p3324_p1 = scmp.lt.s32.totalorder %s17_s13, %s17_s13 }
   0x5   :  { %p3320_p0 = scmp.ne.s32.totalorder %s17_s13, %s3319_s14  ;;  %p3325_p2 = scmp.lt.s32.totalorder %s3319_s14, %s3319_s14 }
   0x7   :  { %p3326_p3 = por %p3325_p2, %p3324_p1 }
   0x9   :  { %p3327_p4 = pnand %p3326_p3, %p3320_p0 }
   0xb   :  { %3330 = shalt.err (!%p3327_p4)
}
   0xc   :  { %s3378_s15 = smov 384   ;;  %s3379_s16 = smov 24  }
   0xd   :  { %22 = dma.hbm_to_vmem [thread:$0]  %s3824_s0, 6144, %s17_s13, [#allocation3], %s3378_s15, %s3378_s15, %s3379_s16  }
   0xe   :  { %s3380_s19 = smov [#allocation5]  }
   0xf   :  { %s28_s20 = sshll.u32 %s3380_s19, 4  ;;  %s29_s20 = int_to_ptr.vmem [resolvable:$true] %s28_s20 }
  0x10   :  { %s3339_s21 = scalar_lea.vmem %s29_s20, 3072  ;;  %p3344_p6 = scmp.lt.s32.totalorder %s29_s20, %s29_s20 }
  0x11   :  { %p3340_p5 = scmp.ne.s32.totalorder %s29_s20, %s3339_s21  ;;  %p3345_p7 = scmp.lt.s32.totalorder %s3339_s21, %s3339_s21 }
  0x13   :  { %p3346_p8 = por %p3345_p7, %p3344_p6 }
  0x15   :  { %p3347_p9 = pnand %p3346_p8, %p3340_p5 }
  0x17   :  { %3350 = shalt.err (!%p3347_p9)
}
  0x18   :  { %s3381_s22 = smov 192   ;;  %s3382_s23 = smov 12  }
  0x19   :  { %34 = dma.hbm_to_vmem [thread:$0]  %s3825_s1, 3072, %s29_s20, [#allocation6], %s3381_s22, %s3381_s22, %s3382_s23  }
  0x1a   :  { %3371 = dma.done.wait [#allocation3], 6144  }
  0x1b   :  { %3372 = vsyncadd [#allocation3], 4294961152 }
  0x1c   :  { %3373 = dma.done.wait [#allocation6], 3072  }
  0x1d   :  { %3374 = vsyncadd [#allocation6], 4294964224  ;;  %v3383_v0 = vmov 0.0   ;;  %v3384_v1 = vmov 0   ;;  %vm3385_vm0 = vmmov 0   ;;  %v84_v34 = vlaneseq  ;;  %v44_v40 = vld [vmem:[#allocation2] sm:$0xff] }
  0x1e   :  { %2867 = vmatprep.subr.bf16.mxu1 %v3383_v0  ;;  %259 = vmatprep.mubr.bf16.mxu0 %v3384_v1  ;;  %v3419_v2 = vld [vmem:[#allocation5 + $0xac] ss:$12 sps:$4 sm:$0xff]   ;;  %v3421_v3 = vld [vmem:[#allocation5 + $0xa8] ss:$12 sps:$4 sm:$0xff]   ;;  %v3427_v5 = vld [vmem:[#allocation5 + $0x90] ss:$12 sps:$4 sm:$0xff]  }
  0x1f   :  { %2883 = vmatprep.mubr.msk.bf16.mxu1 %vm3385_vm0, %v3383_v0  ;;  %227 = vmatprep.subr.bf16.mxu0 %v3419_v2  ;;  %v3424_v4 = vld [vmem:[#allocation5 + $0x94] ss:$12 sps:$4 sm:$0xff]   ;;  %v3430_v6 = vld [vmem:[#allocation5 + $0x7c] ss:$12 sps:$4 sm:$0xff]   ;;  %v3433_v7 = vld [vmem:[#allocation5 + $0x78] ss:$12 sps:$4 sm:$0xff]  }
  0x20   :  { %228 = vmatpush1.bf16.msra.mxu0 %v3421_v3  ;;  %v3436_v8 = vld [vmem:[#allocation5 + $0x64] ss:$12 sps:$4 sm:$0xff]   ;;  %v3438_v9 = vld [vmem:[#allocation5 + $0x60] ss:$12 sps:$4 sm:$0xff]   ;;  %v3446_v13 = vld [vmem:[#allocation5 + $0x48] ss:$12 sps:$4 sm:$0xff]  }
  0x21   :  { %229 = vmatprep.subr.bf16.mxu0 %v3424_v4  ;;  %v3063_v10 = vld [vmem:[#allocation5 + $0xb0] ss:$12 sps:$4 sm:$0xff]   ;;  %v3442_v11 = vld [vmem:[#allocation5 + $0x4c] ss:$12 sps:$4 sm:$0xff]   ;;  %v3449_v14 = vld [vmem:[#allocation5 + $0x34] ss:$12 sps:$4 sm:$0xff]  }
  0x22   :  { %2868 = vmatpush3.bf16.msra.mxu1 %v3063_v10  ;;  %v3064_v12 = vld [vmem:[#allocation5 + $0x98] ss:$12 sps:$4 sm:$0xff]   ;;  %v3065_v15 = vld [vmem:[#allocation5 + $0x80] ss:$12 sps:$4 sm:$0xff]   ;;  %v3451_v16 = vld [vmem:[#allocation5 + $0x30] ss:$12 sps:$4 sm:$0xff]  }
  0x23   :  { %2869 = vmatprep.subr.bf16.mxu1 %v3383_v0  ;;  %v3453_v17 = vld [vmem:[#allocation5 + $0x1c] ss:$12 sps:$4 sm:$0xff]   ;;  %v3458_v19 = vld [vmem:[#allocation5 + $0x18] ss:$12 sps:$4 sm:$0xff]   ;;  %v3465_v22 = vld [vmem:[#allocation5] ss:$12 sps:$4 sm:$0xff]  }
  0x24   :  { %230 = vmatpush1.bf16.msra.mxu0 %v3427_v5  ;;  %v3066_v18 = vld [vmem:[#allocation5 + $0x68] ss:$12 sps:$4 sm:$0xff]   ;;  %v3460_v20 = vld [vmem:[#allocation5 + $0x4] ss:$12 sps:$4 sm:$0xff]   ;;  %v3069_v24 = vld [vmem:[#allocation5 + $0x20] ss:$12 sps:$4 sm:$0xff]  }
  0x25   :  { %231 = vmatprep.subr.bf16.mxu0 %v3430_v6  ;;  %v3067_v21 = vld [vmem:[#allocation5 + $0x50] ss:$12 sps:$4 sm:$0xff]   ;;  %v3068_v23 = vld [vmem:[#allocation5 + $0x38] ss:$12 sps:$4 sm:$0xff]   ;;  %v3070_v25 = vld [vmem:[#allocation5 + $0x8] ss:$12 sps:$4 sm:$0xff]  }
  0x26   :  { %2870 = vmatpush3.bf16.msra.mxu1 %v3064_v12  ;;  %v3071_v26 = vld [vmem:[#allocation5 + $0xb0] ss:$12 sps:$4 sm:$0xff]   ;;  %v3072_v27 = vld [vmem:[#allocation5 + $0x98] ss:$12 sps:$4 sm:$0xff]   ;;  %v3073_v28 = vld [vmem:[#allocation5 + $0x80] ss:$12 sps:$4 sm:$0xff]  }
  0x27   :  { %2871 = vmatprep.subr.bf16.mxu1 %v3383_v0  ;;  %v3074_v29 = vld [vmem:[#allocation5 + $0x68] ss:$12 sps:$4 sm:$0xff]   ;;  %v3075_v30 = vld [vmem:[#allocation5 + $0x50] ss:$12 sps:$4 sm:$0xff]   ;;  %v3076_v31 = vld [vmem:[#allocation5 + $0x38] ss:$12 sps:$4 sm:$0xff]  }
  0x28   :  { %232 = vmatpush1.bf16.msra.mxu0 %v3433_v7  ;;  %v3077_v32 = vld [vmem:[#allocation5 + $0x20] ss:$12 sps:$4 sm:$0xff]   ;;  %v3078_v33 = vld [vmem:[#allocation5 + $0x8] ss:$12 sps:$4 sm:$0xff]   ;;  %v85_v35 = vshrl.u32 %v84_v34, 7  ;;  %v47_v46 = vld [vmem:[#allocation2 + $0x18] sm:$0xff] }
  0x29   :  { %233 = vmatprep.subr.bf16.mxu0 %v3436_v8  ;;  %v82_v37 = vld [vmem:[%s3826_s2] sm:$0x7]  ;;  %v45_v51 = vld [vmem:[#allocation2 + $0x8] sm:$0xff] }
  0x2a   :  { %2872 = vmatpush3.bf16.msra.mxu1 %v3065_v15  ;;  %v3505_v36 = vsub.s32 0, %v85_v35  ;;  %v3511_v39 = vsub.s32 1, %v85_v35  ;;  %v48_v57 = vld [vmem:[#allocation2 + $0x20] sm:$0xff] }
  0x2b   :  { %2873 = vmatprep.subr.bf16.mxu1 %v3383_v0 }
  0x2c   :  { %234 = vmatpush1.bf16.msra.mxu0 %v3438_v9  ;;  %v87_v38 = vrot.slane %v82_v37, %v3505_v36  ;;  %v91_v43 = vrot.slane %v82_v37, %v3511_v39 }
  0x2d   :  { %235 = vmatprep.subr.bf16.mxu0 %v3442_v11 }
  0x2e   :  { %2874 = vmatpush3.bf16.msra.mxu1 %v3066_v18 }
  0x2f   :  { %2875 = vmatprep.subr.bf16.mxu1 %v3383_v0 }
  0x30   :  { %236 = vmatpush1.bf16.msra.mxu0 %v3446_v13 }
  0x31   :  { %237 = vmatprep.subr.bf16.mxu0 %v3449_v14 }
  0x32   :  { %2876 = vmatpush3.bf16.msra.mxu1 %v3067_v21 }
  0x33   :  { %2877 = vmatprep.subr.bf16.mxu1 %v3383_v0 }
  0x34   :  { %238 = vmatpush1.bf16.msra.mxu0 %v3451_v16 }
  0x35   :  { %239 = vmatprep.subr.bf16.mxu0 %v3453_v17 }
  0x36   :  { %2878 = vmatpush3.bf16.msra.mxu1 %v3068_v23  ;;  %v3514_v23 = vsub.s32 2, %v85_v35 }
  0x37   :  { %2879 = vmatprep.subr.bf16.mxu1 %v3383_v0 }
  0x38   :  { %240 = vmatpush1.bf16.msra.mxu0 %v3458_v19 }
  0x39   :  { %241 = vmatprep.subr.bf16.mxu0 %v3460_v20 }
  0x3a   :  { %2880 = vmatpush3.bf16.msra.mxu1 %v3069_v24  ;;  %v95_v24 = vrot.slane %v82_v37, %v3514_v23 }
  0x3b   :  { %2881 = vmatprep.subr.bf16.mxu1 %v3383_v0 }
  0x3c   :  { %242 = vmatpush1.bf16.msra.mxu0 %v3465_v22 }
  0x3d   :  { %540 = vmatprep.subr.bf16.mxu0 %v3419_v2 }
  0x3e   :  { %2882 = vmatpush3.bf16.msra.mxu1 %v3070_v25 }
  0x3f   :  { %260 = vmatmul.mubr.bf16.vlgmr.msra.gmra.mxu0 %v3384_v1  ;;  %2887 = vmatprep.subr.bf16.mxu1 %v3383_v0 }
  0x40   :  { %541 = vmatpush1.bf16.msra.mxu0 %v3421_v3  ;;  %572 = vmatprep.mubr.bf16.mxu0 %v3384_v1 }
  0x41   :  { %542 = vmatprep.subr.bf16.mxu0 %v3424_v4  ;;  %2884 = vmatmul.mubr.bf16.vlgmr.msra.gmra.mxu1 %v3384_v1 }
  0x42   :  { %2903 = vmatprep.mubr.msk.bf16.mxu1 %vm3385_vm0, %v3383_v0  ;;  %2888 = vmatpush3.bf16.msra.mxu1 %v3071_v26 }
  0x43   :  { %2889 = vmatprep.subr.bf16.mxu1 %v3383_v0 }
  0x44   :  { %543 = vmatpush1.bf16.msra.mxu0 %v3427_v5 }
  0x45   :  { %544 = vmatprep.subr.bf16.mxu0 %v3430_v6 }
  0x46   :  { %2890 = vmatpush3.bf16.msra.mxu1 %v3072_v27 }
  0x47   :  { %2891 = vmatprep.subr.bf16.mxu1 %v3383_v0 }
  0x48   :  { %545 = vmatpush1.bf16.msra.mxu0 %v3433_v7 }
  0x49   :  { %546 = vmatprep.subr.bf16.mxu0 %v3436_v8 }
  0x4a   :  { %2892 = vmatpush3.bf16.msra.mxu1 %v3073_v28 }
  0x4b   :  { %2893 = vmatprep.subr.bf16.mxu1 %v3383_v0 }
  0x4c   :  { %547 = vmatpush1.bf16.msra.mxu0 %v3438_v9 }
  0x4d   :  { %548 = vmatprep.subr.bf16.mxu0 %v3442_v11 }
  0x4e   :  { %2894 = vmatpush3.bf16.msra.mxu1 %v3074_v29 }
  0x4f   :  { %2895 = vmatprep.subr.bf16.mxu1 %v3383_v0 }
  0x50   :  { %549 = vmatpush1.bf16.msra.mxu0 %v3446_v13 }
  0x51   :  { %550 = vmatprep.subr.bf16.mxu0 %v3449_v14 }
  0x52   :  { %2896 = vmatpush3.bf16.msra.mxu1 %v3075_v30 }
  0x53   :  { %2897 = vmatprep.subr.bf16.mxu1 %v3383_v0 }
  0x54   :  { %551 = vmatpush1.bf16.msra.mxu0 %v3451_v16 }
  0x55   :  { %552 = vmatprep.subr.bf16.mxu0 %v3453_v17 }
  0x56   :  { %2898 = vmatpush3.bf16.msra.mxu1 %v3076_v31  ;;  %v46_v31 = vld [vmem:[#allocation2 + $0x10] sm:$0xff] }
  0x57   :  { %2899 = vmatprep.subr.bf16.mxu1 %v3383_v0 }
  0x58   :  { %553 = vmatpush1.bf16.msra.mxu0 %v3458_v19 }
  0x59   :  { %554 = vmatprep.subr.bf16.mxu0 %v3460_v20 }
  0x5a   :  { %2900 = vmatpush3.bf16.msra.mxu1 %v3077_v32 }
  0x5b   :  { %2901 = vmatprep.subr.bf16.mxu1 %v3383_v0 }
  0x5c   :  { %555 = vmatpush1.bf16.msra.mxu0 %v3465_v22 }
  0x5d   :  { %854 = vmatprep.subr.bf16.mxu0 %v3419_v2 }
  0x5e   :  { %2902 = vmatpush3.bf16.msra.mxu1 %v3078_v33 }
  0x5f   :  { %2907 = vmatprep.subr.bf16.mxu1 %v3383_v0 }
  0xff   :  { %v261_v41 = vpop.f32.mrf.mxu0 }
 0x100   :  { %v262_v42 = vadd.f32 %v261_v41, %v87_v38 }
 0x101   :  { %v263_v44 = vpop.f32.mrf.mxu0  ;;  %v304_v58 = vpop.f32.mrf.mxu1 }
 0x102   :  { %v311_v45 = vadd.f32 %v262_v42, %v44_v40  ;;  %v264_v49 = vadd.f32 %v263_v44, %v91_v43  ;;  %v305_v28 = vadd.f32 %v304_v58, %v95_v24  ;;  %v49_v40 = vld [vmem:[#allocation2 + $0x28] sm:$0xff]  ;;  %v3083_v58 = vld [vmem:[#allocation5 + $0x50] ss:$12 sps:$4 sm:$0xff]  }
 0x103   :  { %v265_v47 = vpop.f32.mrf.mxu0  ;;  %v2885_v60 = vpop.f32.mrf.mxu1 }
 0x104   :  { %v2595_v48 = vmul.f32 -1.442695, %v311_v45  ;;  %v266_v50 = vadd.f32 %v265_v47, %v87_v38  ;;  %v325_v55 = vadd.f32 %v264_v49, %v45_v51  ;;  %v3086_v60 = vld [vmem:[#allocation5 + $0x8] ss:$12 sps:$4 sm:$0xff]  }
 0x105   :  { %v267_v52 = vpop.f32.mrf.mxu0  ;;  %v307_v62 = vpop.f32.mrf.mxu1 }
 0x106   :  { %3151 = vpow2.f32 %v2595_v48  ;;  %v312_v53 = vadd.f32 %v266_v50, %v47_v46  ;;  %v268_v54 = vadd.f32 %v267_v52, %v91_v43  ;;  %v2597_v61 = vmul.f32 -1.442695, %v325_v55  ;;  %v3080_v55 = vld [vmem:[#allocation5 + $0x98] ss:$12 sps:$4 sm:$0xff]  }
 0x107   :  { %v2886_v10 = vpop.f32.mrf.mxu1  ;;  %v308_v34 = vadd.f32 %v307_v62, %v95_v24 }
 0x108   :  { %v2596_v56 = vmul.f32 -1.442695, %v312_v53  ;;  %v326_v59 = vadd.f32 %v268_v54, %v48_v57  ;;  %v3079_v54 = vld [vmem:[#allocation5 + $0xb0] ss:$12 sps:$4 sm:$0xff]   ;;  %v3082_v57 = vld [vmem:[#allocation5 + $0x68] ss:$12 sps:$4 sm:$0xff]  }
 0x10a   :  { %3153 = vpow2.f32 %v2596_v56  ;;  %v2598_v63 = vmul.f32 -1.442695, %v326_v59  ;;  %v3081_v56 = vld [vmem:[#allocation5 + $0x80] ss:$12 sps:$4 sm:$0xff]   ;;  %v3084_v59 = vld [vmem:[#allocation5 + $0x38] ss:$12 sps:$4 sm:$0xff]  }
 0x10b   :  { %3155 = vpow2.f32 %v2597_v61  ;;  %v395_v61 = vld [vmem:[%s3826_s2] sm:$0x7] }
 0x10c   :  { %3157 = vpow2.f32 %v2598_v63  ;;  %v400_v62 = vrot.slane %v395_v61, %v3505_v36  ;;  %v356_v63 = vld [vmem:[#allocation2 + $0x30] sm:$0xff] }
 0x113   :  { %v3152_v12 = vpop.eup %3151 }
 0x114   :  { %v319_v15 = vadd.f32 1.0, %v3152_v12 }
 0x116   :  { %3159 = vrcp.f32 %v319_v15 }
 0x117   :  { %v3154_v18 = vpop.eup %3153 }
 0x118   :  { %v320_v21 = vadd.f32 1.0, %v3154_v18  ;;  %v3156_v25 = vpop.eup %3155  ;;  %v404_v18 = vrot.slane %v395_v61, %v3511_v39 }
 0x119   :  { %v3158_v26 = vpop.eup %3157  ;;  %v333_v27 = vadd.f32 1.0, %v3156_v25 }
 0x11a   :  { %3161 = vrcp.f32 %v320_v21  ;;  %v334_v30 = vadd.f32 1.0, %v3158_v26  ;;  %v359_v26 = vld [vmem:[#allocation2 + $0x48] sm:$0xff] }
 0x11b   :  { %3163 = vrcp.f32 %v333_v27 }
 0x11c   :  { %3165 = vrcp.f32 %v334_v30 }
 0x123   :  { %v3160_v29 = vpop.eup %3159 }
 0x124   :  { %v339_v32 = vmul.f32 %v3160_v29, %v305_v28 }
 0x126   :  { %v341_v33 = vadd.f32 %v339_v32, %v46_v31  ;;  %v357_v32 = vld [vmem:[#allocation2 + $0x38] sm:$0xff] }
 0x127   :  { %v3162_v38 = vpop.eup %3161 }
 0x128   :  { %3167 = vtanh.f32 %v341_v33  ;;  %v340_v35 = vmul.f32 %v3162_v38, %v308_v34  ;;  %v3164_v42 = vpop.eup %3163 }
 0x129   :  { %v3166_v37 = vpop.eup %3165  ;;  %v345_v43 = vsub.f32 1.0, %v3164_v42  ;;  %v349_v46 = vmul.f32 0.0, %v3164_v42  ;;  %v360_v42 = vld [vmem:[#allocation2 + $0x50] sm:$0xff] }
 0x12a   :  { %v342_v41 = vadd.f32 %v340_v35, %v49_v40  ;;  %v346_v47 = vsub.f32 1.0, %v3166_v37  ;;  %v350_v51 = vmul.f32 0.0, %v3166_v37 }
 0x12c   :  { %3169 = vtanh.f32 %v342_v41 }
 0x135   :  { %v3168_v44 = vpop.eup %3167 }
 0x136   :  { %v347_v45 = vmul.f32 %v3168_v44, %v345_v43 }
 0x138   :  { %v3517_v48 = vadd.f32 %v349_v46, %v347_v45 }
 0x139   :  { %v3170_v49 = vpop.eup %3169 }
 0x13a   :  { %v348_v50 = vmul.f32 %v3170_v49, %v346_v47  ;;  %353 = vst [vmem:[#allocation7] sm:$0xff] %v3517_v48 }
 0x13c   :  { %v3520_v52 = vadd.f32 %v350_v51, %v348_v50  ;;  %v408_v51 = vrot.slane %v395_v61, %v3514_v23 }
 0x13e   :  { %354 = vst [vmem:[#allocation7 + $0x8] sm:$0xff] %v3520_v52  ;;  %v362_v53 = vpack.c.bf16 %v3520_v52, %v3517_v48 }
 0x140   :  { %573 = vmatmul.mubr.bf16.vlgmr.msra.gmra.mxu0 %v362_v53  ;;  %2904 = vmatmul.mubr.bf16.vlgmr.msra.gmra.mxu1 %v362_v53 }
 0x141   :  { %855 = vmatpush1.bf16.msra.mxu0 %v3421_v3  ;;  %886 = vmatprep.mubr.bf16.mxu0 %v3384_v1 }
 0x142   :  { %856 = vmatprep.subr.bf16.mxu0 %v3424_v4  ;;  %2923 = vmatprep.mubr.msk.bf16.mxu1 %vm3385_vm0, %v3383_v0 }
 0x143   :  { %2908 = vmatpush3.bf16.msra.mxu1 %v3079_v54 }
 0x144   :  { %2909 = vmatprep.subr.bf16.mxu1 %v3383_v0 }
 0x145   :  { %857 = vmatpush1.bf16.msra.mxu0 %v3427_v5 }
 0x146   :  { %858 = vmatprep.subr.bf16.mxu0 %v3430_v6 }
 0x147   :  { %2910 = vmatpush3.bf16.msra.mxu1 %v3080_v55 }
 0x148   :  { %2911 = vmatprep.subr.bf16.mxu1 %v3383_v0 }
 0x149   :  { %859 = vmatpush1.bf16.msra.mxu0 %v3433_v7 }
 0x14a   :  { %860 = vmatprep.subr.bf16.mxu0 %v3436_v8 }
 0x14b   :  { %2912 = vmatpush3.bf16.msra.mxu1 %v3081_v56 }
 0x14c   :  { %2913 = vmatprep.subr.bf16.mxu1 %v3383_v0 }
 0x14d   :  { %861 = vmatpush1.bf16.msra.mxu0 %v3438_v9 }
 0x14e   :  { %862 = vmatprep.subr.bf16.mxu0 %v3442_v11 }
 0x14f   :  { %2914 = vmatpush3.bf16.msra.mxu1 %v3082_v57  ;;  %v358_v57 = vld [vmem:[#allocation2 + $0x40] sm:$0xff] }
 0x150   :  { %2915 = vmatprep.subr.bf16.mxu1 %v3383_v0 }
 0x151   :  { %863 = vmatpush1.bf16.msra.mxu0 %v3446_v13 }
 0x152   :  { %864 = vmatprep.subr.bf16.mxu0 %v3449_v14 }
 0x153   :  { %2916 = vmatpush3.bf16.msra.mxu1 %v3083_v58 }
 0x154   :  { %2917 = vmatprep.subr.bf16.mxu1 %v3383_v0 }
 0x155   :  { %865 = vmatpush1.bf16.msra.mxu0 %v3451_v16 }
 0x156   :  { %866 = vmatprep.subr.bf16.mxu0 %v3453_v17 }
 0x157   :  { %2918 = vmatpush3.bf16.msra.mxu1 %v3084_v59 }
 0x158   :  { %2919 = vmatprep.subr.bf16.mxu1 %v3383_v0 }
 0x159   :  { %867 = vmatpush1.bf16.msra.mxu0 %v3458_v19 }
 0x15a   :  { %868 = vmatprep.subr.bf16.mxu0 %v3460_v20 }
 0x15d   :  { %869 = vmatpush1.bf16.msra.mxu0 %v3465_v22 }
 0x15e   :  { %1168 = vmatprep.subr.bf16.mxu0 %v3419_v2  ;;  %v3085_v2 = vld [vmem:[#allocation5 + $0x20] ss:$12 sps:$4 sm:$0xff]  }
 0x15f   :  { %2920 = vmatpush3.bf16.msra.mxu1 %v3085_v2 }
 0x160   :  { %2921 = vmatprep.subr.bf16.mxu1 %v3383_v0 }
 0x163   :  { %2922 = vmatpush3.bf16.msra.mxu1 %v3086_v60 }
 0x164   :  { %2927 = vmatprep.subr.bf16.mxu1 %v3383_v0 }
 0x200   :  { %v574_v10 = vpop.f32.mrf.mxu0  ;;  %v617_v12 = vpop.f32.mrf.mxu1 }
 0x201   :  { %v575_v15 = vadd.f32 %v574_v10, %v400_v62  ;;  %v618_v55 = vadd.f32 %v617_v12, %v408_v51 }
 0x202   :  { %v576_v21 = vpop.f32.mrf.mxu0  ;;  %v2905_v24 = vpop.f32.mrf.mxu1 }
 0x203   :  { %v624_v25 = vadd.f32 %v575_v15, %v356_v63  ;;  %v577_v30 = vadd.f32 %v576_v21, %v404_v18  ;;  %v361_v63 = vld [vmem:[#allocation2 + $0x58] sm:$0xff] }
 0x204   :  { %v578_v27 = vpop.f32.mrf.mxu0  ;;  %v620_v28 = vpop.f32.mrf.mxu1 }
 0x205   :  { %v2623_v29 = vmul.f32 -1.442695, %v624_v25  ;;  %v579_v31 = vadd.f32 %v578_v27, %v400_v62  ;;  %v638_v35 = vadd.f32 %v577_v30, %v357_v32  ;;  %v621_v60 = vadd.f32 %v620_v28, %v408_v51 }
 0x206   :  { %v580_v33 = vpop.f32.mrf.mxu0  ;;  %v2906_v34 = vpop.f32.mrf.mxu1 }
 0x207   :  { %3171 = vpow2.f32 %v2623_v29  ;;  %v625_v38 = vadd.f32 %v579_v31, %v359_v26  ;;  %v581_v40 = vadd.f32 %v580_v33, %v404_v18  ;;  %v2625_v43 = vmul.f32 -1.442695, %v638_v35  ;;  %v673_v34 = vld [vmem:[#allocation2 + $0x78] sm:$0xff] }
 0x209   :  { %v2624_v41 = vmul.f32 -1.442695, %v625_v38  ;;  %v639_v37 = vadd.f32 %v581_v40, %v360_v42 }
 0x20b   :  { %3173 = vpow2.f32 %v2624_v41  ;;  %v2626_v44 = vmul.f32 -1.442695, %v639_v37  ;;  %v671_v37 = vld [vmem:[#allocation2 + $0x68] sm:$0xff] }
 0x20c   :  { %3175 = vpow2.f32 %v2625_v43 }
 0x20d   :  { %3177 = vpow2.f32 %v2626_v44 }
 0x214   :  { %v3172_v45 = vpop.eup %3171 }
 0x215   :  { %v632_v46 = vadd.f32 1.0, %v3172_v45 }
 0x217   :  { %3179 = vrcp.f32 %v632_v46 }
 0x218   :  { %v3174_v47 = vpop.eup %3173 }
 0x219   :  { %v633_v49 = vadd.f32 1.0, %v3174_v47  ;;  %v3176_v50 = vpop.eup %3175 }
 0x21a   :  { %v3178_v53 = vpop.eup %3177  ;;  %v646_v54 = vadd.f32 1.0, %v3176_v50  ;;  %v674_v50 = vld [vmem:[#allocation2 + $0x80] sm:$0xff] }
 0x21b   :  { %3181 = vrcp.f32 %v633_v49  ;;  %v647_v58 = vadd.f32 1.0, %v3178_v53 }
 0x21c   :  { %3183 = vrcp.f32 %v646_v54 }
 0x21d   :  { %3185 = vrcp.f32 %v647_v58 }
 0x224   :  { %v3180_v56 = vpop.eup %3179 }
 0x225   :  { %v652_v59 = vmul.f32 %v3180_v56, %v618_v55 }
 0x227   :  { %v654_v2 = vadd.f32 %v652_v59, %v358_v57 }
 0x228   :  { %v3182_v62 = vpop.eup %3181 }
 0x229   :  { %3187 = vtanh.f32 %v654_v2  ;;  %v653_v10 = vmul.f32 %v3182_v62, %v621_v60  ;;  %v3184_v18 = vpop.eup %3183 }
 0x22a   :  { %v3186_v21 = vpop.eup %3185  ;;  %v658_v61 = vsub.f32 1.0, %v3184_v18  ;;  %v662_v12 = vmul.f32 %v3184_v18, %v3517_v48 }
 0x22b   :  { %v655_v15 = vadd.f32 %v653_v10, %v361_v63  ;;  %v659_v26 = vsub.f32 1.0, %v3186_v21  ;;  %v663_v28 = vmul.f32 %v3186_v21, %v3520_v52 }
 0x22d   :  { %3189 = vtanh.f32 %v655_v15  ;;  %v672_v15 = vld [vmem:[#allocation2 + $0x70] sm:$0xff] }
 0x236   :  { %v3188_v24 = vpop.eup %3187 }
 0x237   :  { %v660_v25 = vmul.f32 %v3188_v24, %v658_v61 }
 0x239   :  { %v3559_v27 = vadd.f32 %v662_v12, %v660_v25  ;;  %v675_v12 = vld [vmem:[#allocation2 + $0x88] sm:$0xff] }
 0x23a   :  { %v3190_v29 = vpop.eup %3189 }
 0x23b   :  { %v661_v30 = vmul.f32 %v3190_v29, %v659_v26  ;;  %667 = vst [vmem:[#allocation7 + $0x10] sm:$0xff] %v3559_v27 }
 0x23d   :  { %v3563_v31 = vadd.f32 %v663_v28, %v661_v30 }
 0x23f   :  { %668 = vst [vmem:[#allocation7 + $0x18] sm:$0xff] %v3563_v31  ;;  %v676_v32 = vpack.c.bf16 %v3563_v31, %v3559_v27 }
 0x241   :  { %887 = vmatmul.mubr.bf16.vlgmr.msra.gmra.mxu0 %v676_v32  ;;  %2924 = vmatmul.mubr.bf16.vlgmr.msra.gmra.mxu1 %v676_v32 }
 0x242   :  { %1169 = vmatpush1.bf16.msra.mxu0 %v3421_v3  ;;  %1200 = vmatprep.mubr.bf16.mxu0 %v3384_v1  ;;  %v3087_v3 = vld [vmem:[#allocation5 + $0xb0] ss:$12 sps:$4 sm:$0xff]  }
 0x243   :  { %1170 = vmatprep.subr.bf16.mxu0 %v3424_v4  ;;  %2943 = vmatprep.mubr.msk.bf16.mxu1 %vm3385_vm0, %v3383_v0  ;;  %v3088_v4 = vld [vmem:[#allocation5 + $0x98] ss:$12 sps:$4 sm:$0xff]  }
 0x244   :  { %2928 = vmatpush3.bf16.msra.mxu1 %v3087_v3 }
 0x245   :  { %2929 = vmatprep.subr.bf16.mxu1 %v3383_v0 }
 0x246   :  { %1171 = vmatpush1.bf16.msra.mxu0 %v3427_v5  ;;  %v3089_v5 = vld [vmem:[#allocation5 + $0x80] ss:$12 sps:$4 sm:$0xff]  }
 0x247   :  { %1172 = vmatprep.subr.bf16.mxu0 %v3430_v6  ;;  %v3090_v6 = vld [vmem:[#allocation5 + $0x68] ss:$12 sps:$4 sm:$0xff]  }
 0x248   :  { %2930 = vmatpush3.bf16.msra.mxu1 %v3088_v4 }
 0x249   :  { %2931 = vmatprep.subr.bf16.mxu1 %v3383_v0 }
 0x24a   :  { %1173 = vmatpush1.bf16.msra.mxu0 %v3433_v7  ;;  %v3091_v7 = vld [vmem:[#allocation5 + $0x50] ss:$12 sps:$4 sm:$0xff]  }
 0x24b   :  { %1174 = vmatprep.subr.bf16.mxu0 %v3436_v8  ;;  %v3092_v8 = vld [vmem:[#allocation5 + $0x38] ss:$12 sps:$4 sm:$0xff]  }
 0x24c   :  { %2932 = vmatpush3.bf16.msra.mxu1 %v3089_v5 }
 0x24d   :  { %2933 = vmatprep.subr.bf16.mxu1 %v3383_v0 }
 0x24e   :  { %1175 = vmatpush1.bf16.msra.mxu0 %v3438_v9  ;;  %v3093_v9 = vld [vmem:[#allocation5 + $0x20] ss:$12 sps:$4 sm:$0xff]  }
 0x24f   :  { %1176 = vmatprep.subr.bf16.mxu0 %v3442_v11  ;;  %v3094_v11 = vld [vmem:[#allocation5 + $0x8] ss:$12 sps:$4 sm:$0xff]  }
 0x250   :  { %2934 = vmatpush3.bf16.msra.mxu1 %v3090_v6 }
 0x251   :  { %2935 = vmatprep.subr.bf16.mxu1 %v3383_v0 }
 0x252   :  { %1177 = vmatpush1.bf16.msra.mxu0 %v3446_v13  ;;  %v709_v13 = vld [vmem:[%s3826_s2] sm:$0x7] }
 0x253   :  { %1178 = vmatprep.subr.bf16.mxu0 %v3449_v14  ;;  %v714_v14 = vrot.slane %v709_v13, %v3505_v36  ;;  %v722_v2 = vrot.slane %v709_v13, %v3514_v23 }
 0x254   :  { %2936 = vmatpush3.bf16.msra.mxu1 %v3091_v7 }
 0x255   :  { %2937 = vmatprep.subr.bf16.mxu1 %v3383_v0 }
 0x256   :  { %1179 = vmatpush1.bf16.msra.mxu0 %v3451_v16  ;;  %v670_v16 = vld [vmem:[#allocation2 + $0x60] sm:$0xff] }
 0x257   :  { %1180 = vmatprep.subr.bf16.mxu0 %v3453_v17 }
 0x258   :  { %2938 = vmatpush3.bf16.msra.mxu1 %v3092_v8 }
 0x259   :  { %2939 = vmatprep.subr.bf16.mxu1 %v3383_v0 }
 0x25a   :  { %1181 = vmatpush1.bf16.msra.mxu0 %v3458_v19 }
 0x25b   :  { %1182 = vmatprep.subr.bf16.mxu0 %v3460_v20 }
 0x25c   :  { %2940 = vmatpush3.bf16.msra.mxu1 %v3093_v9 }
 0x25d   :  { %2941 = vmatprep.subr.bf16.mxu1 %v3383_v0 }
 0x25e   :  { %1183 = vmatpush1.bf16.msra.mxu0 %v3465_v22  ;;  %v718_v22 = vrot.slane %v709_v13, %v3511_v39 }
 0x260   :  { %2942 = vmatpush3.bf16.msra.mxu1 %v3094_v11 }
 0x261   :  { %2947 = vmatprep.subr.bf16.mxu1 %v3383_v0 }
 0x301   :  { %v888_v17 = vpop.f32.mrf.mxu0  ;;  %v931_v19 = vpop.f32.mrf.mxu1 }
 0x302   :  { %v889_v20 = vadd.f32 %v888_v17, %v714_v14  ;;  %v932_v63 = vadd.f32 %v931_v19, %v722_v2  ;;  %v3619_v17 = vld [vmem:[#allocation5 + $0x94] ss:$12 sps:$4 sm:$0xff]   ;;  %v3622_v19 = vld [vmem:[#allocation5 + $0x90] ss:$12 sps:$4 sm:$0xff]  }
 0x303   :  { %v890_v48 = vpop.f32.mrf.mxu0  ;;  %v2925_v52 = vpop.f32.mrf.mxu1 }
 0x304   :  { %v938_v33 = vadd.f32 %v889_v20, %v670_v16  ;;  %v891_v41 = vadd.f32 %v890_v48, %v718_v22  ;;  %v3615_v16 = vld [vmem:[#allocation5 + $0xa8] ss:$12 sps:$4 sm:$0xff]   ;;  %v3102_v20 = vld [vmem:[#allocation5 + $0x98] ss:$12 sps:$4 sm:$0xff]   ;;  %v3106_v52 = vld [vmem:[#allocation5 + $0x80] ss:$12 sps:$4 sm:$0xff]  }
 0x305   :  { %v892_v38 = vpop.f32.mrf.mxu0  ;;  %v934_v40 = vpop.f32.mrf.mxu1  ;;  %v3629_v48 = vld [vmem:[#allocation5 + $0x78] ss:$12 sps:$4 sm:$0xff]  }
 0x306   :  { %v2651_v35 = vmul.f32 -1.442695, %v938_v33  ;;  %v893_v42 = vadd.f32 %v892_v38, %v714_v14  ;;  %v952_v47 = vadd.f32 %v891_v41, %v671_v37  ;;  %v935_v24 = vadd.f32 %v934_v40, %v722_v2  ;;  %v3633_v33 = vld [vmem:[#allocation5 + $0x64] ss:$12 sps:$4 sm:$0xff]   ;;  %v3110_v38 = vld [vmem:[#allocation5 + $0x68] ss:$12 sps:$4 sm:$0xff]  }
 0x307   :  { %v894_v43 = vpop.f32.mrf.mxu0  ;;  %v2926_v44 = vpop.f32.mrf.mxu1  ;;  %v3639_v40 = vld [vmem:[#allocation5 + $0x4c] ss:$12 sps:$4 sm:$0xff]   ;;  %v3114_v41 = vld [vmem:[#allocation5 + $0x50] ss:$12 sps:$4 sm:$0xff]  }
 0x308   :  { %3191 = vpow2.f32 %v2651_v35  ;;  %v939_v45 = vadd.f32 %v893_v42, %v673_v34  ;;  %v895_v46 = vadd.f32 %v894_v43, %v718_v22  ;;  %v2653_v53 = vmul.f32 -1.442695, %v952_v47  ;;  %v3626_v22 = vld [vmem:[#allocation5 + $0x7c] ss:$12 sps:$4 sm:$0xff]   ;;  %v3636_v34 = vld [vmem:[#allocation5 + $0x60] ss:$12 sps:$4 sm:$0xff]  }
 0x309   :  { %v3642_v35 = vld [vmem:[#allocation5 + $0x48] ss:$12 sps:$4 sm:$0xff]   ;;  %v3649_v37 = vld [vmem:[#allocation5 + $0x30] ss:$12 sps:$4 sm:$0xff]   ;;  %v3118_v43 = vld [vmem:[#allocation5 + $0x38] ss:$12 sps:$4 sm:$0xff]  }
 0x30a   :  { %v2652_v49 = vmul.f32 -1.442695, %v939_v45  ;;  %v953_v51 = vadd.f32 %v895_v46, %v674_v50  ;;  %v3646_v42 = vld [vmem:[#allocation5 + $0x34] ss:$12 sps:$4 sm:$0xff]   ;;  %v3653_v44 = vld [vmem:[#allocation5 + $0x1c] ss:$12 sps:$4 sm:$0xff]  }
 0x30b   :  { %v3656_v45 = vld [vmem:[#allocation5 + $0x18] ss:$12 sps:$4 sm:$0xff]   ;;  %v3122_v46 = vld [vmem:[#allocation5 + $0x20] ss:$12 sps:$4 sm:$0xff]   ;;  %v3126_v50 = vld [vmem:[#allocation5 + $0x8] ss:$12 sps:$4 sm:$0xff]  }
 0x30c   :  { %3193 = vpow2.f32 %v2652_v49  ;;  %v2654_v54 = vmul.f32 -1.442695, %v953_v51  ;;  %v3660_v47 = vld [vmem:[#allocation5 + $0x4] ss:$12 sps:$4 sm:$0xff]   ;;  %v3663_v49 = vld [vmem:[#allocation5] ss:$12 sps:$4 sm:$0xff]  }
 0x30d   :  { %3195 = vpow2.f32 %v2653_v53  ;;  %v1023_v51 = vld [vmem:[%s3826_s2] sm:$0x7] }
 0x30e   :  { %3197 = vpow2.f32 %v2654_v54  ;;  %v1028_v53 = vrot.slane %v1023_v51, %v3505_v36  ;;  %v984_v54 = vld [vmem:[#allocation2 + $0x90] sm:$0xff] }
 0x315   :  { %v3192_v55 = vpop.eup %3191 }
 0x316   :  { %v946_v56 = vadd.f32 1.0, %v3192_v55 }
 0x318   :  { %3199 = vrcp.f32 %v946_v56 }
 0x319   :  { %v3194_v57 = vpop.eup %3193 }
 0x31a   :  { %v947_v58 = vadd.f32 1.0, %v3194_v57  ;;  %v3196_v59 = vpop.eup %3195 }
 0x31b   :  { %v3198_v60 = vpop.eup %3197  ;;  %v960_v62 = vadd.f32 1.0, %v3196_v59 }
 0x31c   :  { %3201 = vrcp.f32 %v947_v58  ;;  %v961_v18 = vadd.f32 1.0, %v3198_v60  ;;  %v1032_v58 = vrot.slane %v1023_v51, %v3511_v39 }
 0x31d   :  { %3203 = vrcp.f32 %v960_v62  ;;  %v987_v62 = vld [vmem:[#allocation2 + $0xa8] sm:$0xff] }
 0x31e   :  { %3205 = vrcp.f32 %v961_v18 }
 0x325   :  { %v3200_v10 = vpop.eup %3199 }
 0x326   :  { %v966_v21 = vmul.f32 %v3200_v10, %v932_v63 }
 0x328   :  { %v968_v61 = vadd.f32 %v966_v21, %v672_v15 }
 0x329   :  { %v3202_v25 = vpop.eup %3201 }
 0x32a   :  { %3207 = vtanh.f32 %v968_v61  ;;  %v967_v26 = vmul.f32 %v3202_v25, %v935_v24  ;;  %v3204_v30 = vpop.eup %3203  ;;  %v985_v61 = vld [vmem:[#allocation2 + $0x98] sm:$0xff] }
 0x32b   :  { %v3206_v28 = vpop.eup %3205  ;;  %v972_v32 = vsub.f32 1.0, %v3204_v30  ;;  %v976_v5 = vmul.f32 %v3204_v30, %v3559_v27  ;;  %v3613_v27 = vld [vmem:[#allocation5 + $0xac] ss:$12 sps:$4 sm:$0xff]  }
 0x32c   :  { %v969_v29 = vadd.f32 %v967_v26, %v675_v12  ;;  %v973_v6 = vsub.f32 1.0, %v3206_v28  ;;  %v977_v11 = vmul.f32 %v3206_v28, %v3563_v31  ;;  %v3098_v31 = vld [vmem:[#allocation5 + $0xb0] ss:$12 sps:$4 sm:$0xff]   ;;  %1482 = vmatprep.subr.bf16.mxu0 %v3613_v27 }
 0x32d   :  { %v988_v28 = vld [vmem:[#allocation2 + $0xb0] sm:$0xff] }
 0x32e   :  { %3209 = vtanh.f32 %v969_v29 }
 0x337   :  { %v3208_v3 = vpop.eup %3207 }
 0x338   :  { %v974_v4 = vmul.f32 %v3208_v3, %v972_v32 }
 0x33a   :  { %v3601_v7 = vadd.f32 %v976_v5, %v974_v4 }
 0x33b   :  { %v3210_v8 = vpop.eup %3209 }
 0x33c   :  { %v975_v9 = vmul.f32 %v3210_v8, %v973_v6  ;;  %981 = vst [vmem:[#allocation7 + $0x20] sm:$0xff] %v3601_v7 }
 0x33e   :  { %v3605_v13 = vadd.f32 %v977_v11, %v975_v9 }
 0x340   :  { %982 = vst [vmem:[#allocation7 + $0x28] sm:$0xff] %v3605_v13  ;;  %v990_v14 = vpack.c.bf16 %v3605_v13, %v3601_v7 }
 0x342   :  { %1201 = vmatmul.mubr.bf16.vlgmr.msra.gmra.mxu0 %v990_v14  ;;  %2944 = vmatmul.mubr.bf16.vlgmr.msra.gmra.mxu1 %v990_v14  ;;  %v1036_v14 = vrot.slane %v1023_v51, %v3514_v23 }
 0x343   :  { %1514 = vmatprep.mubr.bf16.mxu0 %v3384_v1  ;;  %2963 = vmatprep.mubr.msk.bf16.mxu1 %vm3385_vm0, %v3383_v0 }
 0x344   :  { %1483 = vmatpush1.bf16.msra.mxu0 %v3615_v16  ;;  %2948 = vmatpush3.bf16.msra.mxu1 %v3098_v31 }
 0x345   :  { %2949 = vmatprep.subr.bf16.mxu1 %v3383_v0  ;;  %1484 = vmatprep.subr.bf16.mxu0 %v3619_v17 }
 0x348   :  { %1485 = vmatpush1.bf16.msra.mxu0 %v3622_v19  ;;  %2950 = vmatpush3.bf16.msra.mxu1 %v3102_v20 }
 0x349   :  { %2951 = vmatprep.subr.bf16.mxu1 %v3383_v0  ;;  %1486 = vmatprep.subr.bf16.mxu0 %v3626_v22 }
 0x34c   :  { %1487 = vmatpush1.bf16.msra.mxu0 %v3629_v48  ;;  %2952 = vmatpush3.bf16.msra.mxu1 %v3106_v52 }
 0x34d   :  { %2953 = vmatprep.subr.bf16.mxu1 %v3383_v0  ;;  %1488 = vmatprep.subr.bf16.mxu0 %v3633_v33 }
 0x350   :  { %1489 = vmatpush1.bf16.msra.mxu0 %v3636_v34  ;;  %2954 = vmatpush3.bf16.msra.mxu1 %v3110_v38 }
 0x351   :  { %1490 = vmatprep.subr.bf16.mxu0 %v3639_v40  ;;  %2955 = vmatprep.subr.bf16.mxu1 %v3383_v0 }
 0x354   :  { %1491 = vmatpush1.bf16.msra.mxu0 %v3642_v35  ;;  %2956 = vmatpush3.bf16.msra.mxu1 %v3114_v41  ;;  %v986_v41 = vld [vmem:[#allocation2 + $0xa0] sm:$0xff] }
 0x355   :  { %1492 = vmatprep.subr.bf16.mxu0 %v3646_v42  ;;  %2957 = vmatprep.subr.bf16.mxu1 %v3383_v0 }
 0x358   :  { %1493 = vmatpush1.bf16.msra.mxu0 %v3649_v37  ;;  %2958 = vmatpush3.bf16.msra.mxu1 %v3118_v43 }
 0x359   :  { %1494 = vmatprep.subr.bf16.mxu0 %v3653_v44  ;;  %2959 = vmatprep.subr.bf16.mxu1 %v3383_v0 }
 0x35c   :  { %1495 = vmatpush1.bf16.msra.mxu0 %v3656_v45  ;;  %2960 = vmatpush3.bf16.msra.mxu1 %v3122_v46 }
 0x35d   :  { %1496 = vmatprep.subr.bf16.mxu0 %v3660_v47  ;;  %2961 = vmatprep.subr.bf16.mxu1 %v3383_v0 }
 0x360   :  { %1497 = vmatpush1.bf16.msra.mxu0 %v3663_v49  ;;  %2962 = vmatpush3.bf16.msra.mxu1 %v3126_v50 }
 0x361   :  { %1796 = vmatprep.subr.bf16.mxu0 %v3613_v27  ;;  %2967 = vmatprep.subr.bf16.mxu1 %v3383_v0 }
 0x402   :  { %v1202_v55 = vpop.f32.mrf.mxu0  ;;  %v1245_v56 = vpop.f32.mrf.mxu1 }
 0x403   :  { %v1203_v57 = vadd.f32 %v1202_v55, %v1028_v53  ;;  %v1246_v52 = vadd.f32 %v1245_v56, %v1036_v14  ;;  %v989_v55 = vld [vmem:[#allocation2 + $0xb8] sm:$0xff] }
 0x404   :  { %v1204_v59 = vpop.f32.mrf.mxu0  ;;  %v2945_v2 = vpop.f32.mrf.mxu1 }
 0x405   :  { %v1252_v60 = vadd.f32 %v1203_v57, %v984_v54  ;;  %v1205_v18 = vadd.f32 %v1204_v59, %v1032_v58 }
 0x406   :  { %v1206_v63 = vpop.f32.mrf.mxu0  ;;  %v1248_v10 = vpop.f32.mrf.mxu1 }
 0x407   :  { %v2679_v15 = vmul.f32 -1.442695, %v1252_v60  ;;  %v1207_v21 = vadd.f32 %v1206_v63, %v1028_v53  ;;  %v1266_v29 = vadd.f32 %v1205_v18, %v985_v61  ;;  %v1249_v53 = vadd.f32 %v1248_v10, %v1036_v14 }
 0x408   :  { %v1208_v24 = vpop.f32.mrf.mxu0  ;;  %v2946_v25 = vpop.f32.mrf.mxu1 }
 0x409   :  { %3211 = vpow2.f32 %v2679_v15  ;;  %v1253_v12 = vadd.f32 %v1207_v21, %v987_v62  ;;  %v1209_v26 = vadd.f32 %v1208_v24, %v1032_v58  ;;  %v2681_v3 = vmul.f32 -1.442695, %v1266_v29  ;;  %v3129_v25 = vld [vmem:[#allocation5 + $0x80] ss:$12 sps:$4 sm:$0xff]   ;;  %v3132_v29 = vld [vmem:[#allocation5 + $0x38] ss:$12 sps:$4 sm:$0xff]  }
 0x40b   :  { %v2680_v30 = vmul.f32 -1.442695, %v1253_v12  ;;  %v1267_v32 = vadd.f32 %v1209_v26, %v988_v28  ;;  %v3130_v12 = vld [vmem:[#allocation5 + $0x68] ss:$12 sps:$4 sm:$0xff]   ;;  %v3131_v26 = vld [vmem:[#allocation5 + $0x50] ss:$12 sps:$4 sm:$0xff]  }
 0x40c   :  { %v3134_v28 = vld [vmem:[#allocation5 + $0x8] ss:$12 sps:$4 sm:$0xff]  }
 0x40d   :  { %3213 = vpow2.f32 %v2680_v30  ;;  %v2682_v4 = vmul.f32 -1.442695, %v1267_v32  ;;  %v3133_v30 = vld [vmem:[#allocation5 + $0x20] ss:$12 sps:$4 sm:$0xff]  }
 0x40e   :  { %3215 = vpow2.f32 %v2681_v3  ;;  %v1337_v32 = vld [vmem:[%s3826_s2] sm:$0x7] }
 0x40f   :  { %3217 = vpow2.f32 %v2682_v4  ;;  %v1342_v3 = vrot.slane %v1337_v32, %v3505_v36  ;;  %v1298_v4 = vld [vmem:[#allocation2 + $0xc0] sm:$0xff] }
 0x416   :  { %v3212_v5 = vpop.eup %3211 }
 0x417   :  { %v1260_v6 = vadd.f32 1.0, %v3212_v5 }
 0x419   :  { %3219 = vrcp.f32 %v1260_v6 }
 0x41a   :  { %v3214_v8 = vpop.eup %3213 }
 0x41b   :  { %v1261_v9 = vadd.f32 1.0, %v3214_v8  ;;  %v3216_v11 = vpop.eup %3215 }
 0x41c   :  { %v3218_v31 = vpop.eup %3217  ;;  %v1274_v20 = vadd.f32 1.0, %v3216_v11 }
 0x41d   :  { %3221 = vrcp.f32 %v1261_v9  ;;  %v1275_v43 = vadd.f32 1.0, %v3218_v31  ;;  %v1346_v9 = vrot.slane %v1337_v32, %v3511_v39 }
 0x41e   :  { %3223 = vrcp.f32 %v1274_v20  ;;  %v1301_v20 = vld [vmem:[#allocation2 + $0xd8] sm:$0xff] }
 0x41f   :  { %3225 = vrcp.f32 %v1275_v43 }
 0x426   :  { %v3220_v38 = vpop.eup %3219 }
 0x427   :  { %v1280_v46 = vmul.f32 %v3220_v38, %v1246_v52 }
 0x429   :  { %v1282_v50 = vadd.f32 %v1280_v46, %v986_v41 }
 0x42a   :  { %v3222_v54 = vpop.eup %3221 }
 0x42b   :  { %3227 = vtanh.f32 %v1282_v50  ;;  %v1281_v57 = vmul.f32 %v3222_v54, %v1249_v53  ;;  %v3224_v59 = vpop.eup %3223  ;;  %v1299_v50 = vld [vmem:[#allocation2 + $0xc8] sm:$0xff] }
 0x42c   :  { %v3226_v2 = vpop.eup %3225  ;;  %v1286_v51 = vsub.f32 1.0, %v3224_v59  ;;  %v1290_v56 = vmul.f32 %v3224_v59, %v3601_v7  ;;  %v3127_v7 = vld [vmem:[#allocation5 + $0xb0] ss:$12 sps:$4 sm:$0xff]  }
 0x42d   :  { %v1283_v58 = vadd.f32 %v1281_v57, %v989_v55  ;;  %v1287_v63 = vsub.f32 1.0, %v3226_v2  ;;  %v1291_v10 = vmul.f32 %v3226_v2, %v3605_v13  ;;  %v3128_v13 = vld [vmem:[#allocation5 + $0x98] ss:$12 sps:$4 sm:$0xff]  }
 0x42e   :  { %v1302_v2 = vld [vmem:[#allocation2 + $0xe0] sm:$0xff] }
 0x42f   :  { %3229 = vtanh.f32 %v1283_v58 }
 0x438   :  { %v3228_v60 = vpop.eup %3227 }
 0x439   :  { %v1288_v62 = vmul.f32 %v3228_v60, %v1286_v51 }
 0x43b   :  { %v3677_v15 = vadd.f32 %v1290_v56, %v1288_v62 }
 0x43c   :  { %v3230_v18 = vpop.eup %3229 }
 0x43d   :  { %v1289_v21 = vmul.f32 %v3230_v18, %v1287_v63  ;;  %1295 = vst [vmem:[#allocation7 + $0x30] sm:$0xff] %v3677_v15 }
 0x43f   :  { %v3681_v61 = vadd.f32 %v1291_v10, %v1289_v21 }
 0x441   :  { %1296 = vst [vmem:[#allocation7 + $0x38] sm:$0xff] %v3681_v61  ;;  %v1304_v24 = vpack.c.bf16 %v3681_v61, %v3677_v15 }
 0x443   :  { %1515 = vmatmul.mubr.bf16.vlgmr.msra.gmra.mxu0 %v1304_v24  ;;  %2964 = vmatmul.mubr.bf16.vlgmr.msra.gmra.mxu1 %v1304_v24  ;;  %v1350_v24 = vrot.slane %v1337_v32, %v3514_v23 }
 0x444   :  { %1797 = vmatpush1.bf16.msra.mxu0 %v3615_v16  ;;  %1828 = vmatprep.mubr.bf16.mxu0 %v3384_v1 }
 0x445   :  { %1798 = vmatprep.subr.bf16.mxu0 %v3619_v17  ;;  %2983 = vmatprep.mubr.msk.bf16.mxu1 %vm3385_vm0, %v3383_v0 }
 0x446   :  { %2968 = vmatpush3.bf16.msra.mxu1 %v3127_v7 }
 0x447   :  { %2969 = vmatprep.subr.bf16.mxu1 %v3383_v0 }
 0x448   :  { %1799 = vmatpush1.bf16.msra.mxu0 %v3622_v19 }
 0x449   :  { %1800 = vmatprep.subr.bf16.mxu0 %v3626_v22 }
 0x44a   :  { %2970 = vmatpush3.bf16.msra.mxu1 %v3128_v13 }
 0x44b   :  { %2971 = vmatprep.subr.bf16.mxu1 %v3383_v0 }
 0x44c   :  { %1801 = vmatpush1.bf16.msra.mxu0 %v3629_v48 }
 0x44d   :  { %1802 = vmatprep.subr.bf16.mxu0 %v3633_v33 }
 0x44e   :  { %2972 = vmatpush3.bf16.msra.mxu1 %v3129_v25 }
 0x44f   :  { %2973 = vmatprep.subr.bf16.mxu1 %v3383_v0 }
 0x450   :  { %1803 = vmatpush1.bf16.msra.mxu0 %v3636_v34 }
 0x451   :  { %1804 = vmatprep.subr.bf16.mxu0 %v3639_v40 }
 0x452   :  { %2974 = vmatpush3.bf16.msra.mxu1 %v3130_v12 }
 0x453   :  { %2975 = vmatprep.subr.bf16.mxu1 %v3383_v0 }
 0x454   :  { %1805 = vmatpush1.bf16.msra.mxu0 %v3642_v35 }
 0x455   :  { %1806 = vmatprep.subr.bf16.mxu0 %v3646_v42 }
 0x456   :  { %2976 = vmatpush3.bf16.msra.mxu1 %v3131_v26  ;;  %v1300_v26 = vld [vmem:[#allocation2 + $0xd0] sm:$0xff] }
 0x457   :  { %2977 = vmatprep.subr.bf16.mxu1 %v3383_v0 }
 0x458   :  { %1807 = vmatpush1.bf16.msra.mxu0 %v3649_v37 }
 0x459   :  { %1808 = vmatprep.subr.bf16.mxu0 %v3653_v44 }
 0x45a   :  { %2978 = vmatpush3.bf16.msra.mxu1 %v3132_v29 }
 0x45b   :  { %2979 = vmatprep.subr.bf16.mxu1 %v3383_v0 }
 0x45c   :  { %1809 = vmatpush1.bf16.msra.mxu0 %v3656_v45 }
 0x45d   :  { %1810 = vmatprep.subr.bf16.mxu0 %v3660_v47 }
 0x45e   :  { %2980 = vmatpush3.bf16.msra.mxu1 %v3133_v30 }
 0x45f   :  { %2981 = vmatprep.subr.bf16.mxu1 %v3383_v0 }
 0x460   :  { %1811 = vmatpush1.bf16.msra.mxu0 %v3663_v49 }
 0x461   :  { %2110 = vmatprep.subr.bf16.mxu0 %v3613_v27 }
 0x462   :  { %2982 = vmatpush3.bf16.msra.mxu1 %v3134_v28 }
 0x463   :  { %2987 = vmatprep.subr.bf16.mxu1 %v3383_v0 }
 0x503   :  { %v1516_v5 = vpop.f32.mrf.mxu0  ;;  %v1559_v6 = vpop.f32.mrf.mxu1 }
 0x504   :  { %v1517_v8 = vadd.f32 %v1516_v5, %v1342_v3  ;;  %v1560_v25 = vadd.f32 %v1559_v6, %v1350_v24  ;;  %v1303_v5 = vld [vmem:[#allocation2 + $0xe8] sm:$0xff] }
 0x505   :  { %v1518_v11 = vpop.f32.mrf.mxu0  ;;  %v2965_v14 = vpop.f32.mrf.mxu1 }
 0x506   :  { %v1566_v31 = vadd.f32 %v1517_v8, %v1298_v4  ;;  %v1519_v43 = vadd.f32 %v1518_v11, %v1346_v9 }
 0x507   :  { %v1520_v52 = vpop.f32.mrf.mxu0  ;;  %v1562_v38 = vpop.f32.mrf.mxu1 }
 0x508   :  { %v2707_v41 = vmul.f32 -1.442695, %v1566_v31  ;;  %v1521_v46 = vadd.f32 %v1520_v52, %v1342_v3  ;;  %v1580_v58 = vadd.f32 %v1519_v43, %v1299_v50  ;;  %v1563_v3 = vadd.f32 %v1562_v38, %v1350_v24 }
 0x509   :  { %v1522_v53 = vpop.f32.mrf.mxu0  ;;  %v2966_v54 = vpop.f32.mrf.mxu1 }
 0x50a   :  { %3231 = vpow2.f32 %v2707_v41  ;;  %v1567_v55 = vadd.f32 %v1521_v46, %v1301_v20  ;;  %v1523_v57 = vadd.f32 %v1522_v53, %v1346_v9  ;;  %v2709_v60 = vmul.f32 -1.442695, %v1580_v58  ;;  %v3137_v54 = vld [vmem:[#allocation5 + $0x80] ss:$12 sps:$4 sm:$0xff]   ;;  %v3140_v58 = vld [vmem:[#allocation5 + $0x38] ss:$12 sps:$4 sm:$0xff]  }
 0x50c   :  { %v2708_v59 = vmul.f32 -1.442695, %v1567_v55  ;;  %v1581_v51 = vadd.f32 %v1523_v57, %v1302_v2  ;;  %v3138_v55 = vld [vmem:[#allocation5 + $0x68] ss:$12 sps:$4 sm:$0xff]   ;;  %v3139_v57 = vld [vmem:[#allocation5 + $0x50] ss:$12 sps:$4 sm:$0xff]  }
 0x50d   :  { %v1651_v2 = vld [vmem:[%s3826_s2] sm:$0x7] }
 0x50e   :  { %3233 = vpow2.f32 %v2708_v59  ;;  %v2710_v62 = vmul.f32 -1.442695, %v1581_v51  ;;  %v3142_v59 = vld [vmem:[#allocation5 + $0x8] ss:$12 sps:$4 sm:$0xff]   ;;  %v1656_v51 = vrot.slane %v1651_v2, %v3505_v36 }
 0x50f   :  { %3235 = vpow2.f32 %v2709_v60  ;;  %v1612_v60 = vld [vmem:[#allocation2 + $0xf0] sm:$0xff] }
 0x510   :  { %3237 = vpow2.f32 %v2710_v62 }
 0x517   :  { %v3232_v56 = vpop.eup %3231 }
 0x518   :  { %v1574_v63 = vadd.f32 1.0, %v3232_v56 }
 0x51a   :  { %3239 = vrcp.f32 %v1574_v63 }
 0x51b   :  { %v3234_v18 = vpop.eup %3233 }
 0x51c   :  { %v1575_v21 = vadd.f32 1.0, %v3234_v18  ;;  %v3236_v10 = vpop.eup %3235  ;;  %v1660_v18 = vrot.slane %v1651_v2, %v3511_v39 }
 0x51d   :  { %v3238_v7 = vpop.eup %3237  ;;  %v1588_v13 = vadd.f32 1.0, %v3236_v10 }
 0x51e   :  { %3241 = vrcp.f32 %v1575_v21  ;;  %v1589_v29 = vadd.f32 1.0, %v3238_v7  ;;  %v1615_v7 = vld [vmem:[#allocation2 + $0x108] sm:$0xff] }
 0x51f   :  { %3243 = vrcp.f32 %v1588_v13 }
 0x520   :  { %3245 = vrcp.f32 %v1589_v29 }
 0x527   :  { %v3240_v12 = vpop.eup %3239 }
 0x528   :  { %v1594_v30 = vmul.f32 %v3240_v12, %v1560_v25 }
 0x52a   :  { %v1596_v28 = vadd.f32 %v1594_v30, %v1300_v26  ;;  %v1613_v30 = vld [vmem:[#allocation2 + $0xf8] sm:$0xff] }
 0x52b   :  { %v3242_v4 = vpop.eup %3241 }
 0x52c   :  { %3247 = vtanh.f32 %v1596_v28  ;;  %v1595_v8 = vmul.f32 %v3242_v4, %v1563_v3  ;;  %v3244_v11 = vpop.eup %3243 }
 0x52d   :  { %v3246_v14 = vpop.eup %3245  ;;  %v1600_v32 = vsub.f32 1.0, %v3244_v11  ;;  %v1604_v6 = vmul.f32 %v3244_v11, %v3677_v15  ;;  %v3135_v15 = vld [vmem:[#allocation5 + $0xb0] ss:$12 sps:$4 sm:$0xff]  }
 0x52e   :  { %v1597_v9 = vadd.f32 %v1595_v8, %v1303_v5  ;;  %v1601_v52 = vsub.f32 1.0, %v3246_v14  ;;  %v1605_v38 = vmul.f32 %v3246_v14, %v3681_v61  ;;  %v3136_v61 = vld [vmem:[#allocation5 + $0x98] ss:$12 sps:$4 sm:$0xff]   ;;  %v1616_v11 = vld [vmem:[#allocation2 + $0x110] sm:$0xff] }
 0x530   :  { %3249 = vtanh.f32 %v1597_v9 }
 0x539   :  { %v3248_v31 = vpop.eup %3247 }
 0x53a   :  { %v1602_v20 = vmul.f32 %v3248_v31, %v1600_v32 }
 0x53c   :  { %v3720_v41 = vadd.f32 %v1604_v6, %v1602_v20 }
 0x53d   :  { %v3250_v43 = vpop.eup %3249 }
 0x53e   :  { %v1603_v46 = vmul.f32 %v3250_v43, %v1601_v52  ;;  %1609 = vst [vmem:[#allocation7 + $0x40] sm:$0xff] %v3720_v41 }
 0x540   :  { %v3724_v50 = vadd.f32 %v1605_v38, %v1603_v46  ;;  %v1664_v38 = vrot.slane %v1651_v2, %v3514_v23 }
 0x542   :  { %1610 = vst [vmem:[#allocation7 + $0x48] sm:$0xff] %v3724_v50  ;;  %v1618_v53 = vpack.c.bf16 %v3724_v50, %v3720_v41 }
 0x544   :  { %1829 = vmatmul.mubr.bf16.vlgmr.msra.gmra.mxu0 %v1618_v53  ;;  %2984 = vmatmul.mubr.bf16.vlgmr.msra.gmra.mxu1 %v1618_v53 }
 0x545   :  { %2111 = vmatpush1.bf16.msra.mxu0 %v3615_v16  ;;  %2142 = vmatprep.mubr.bf16.mxu0 %v3384_v1 }
 0x546   :  { %2112 = vmatprep.subr.bf16.mxu0 %v3619_v17  ;;  %3003 = vmatprep.mubr.msk.bf16.mxu1 %vm3385_vm0, %v3383_v0 }
 0x547   :  { %2988 = vmatpush3.bf16.msra.mxu1 %v3135_v15 }
 0x548   :  { %2989 = vmatprep.subr.bf16.mxu1 %v3383_v0 }
 0x549   :  { %2113 = vmatpush1.bf16.msra.mxu0 %v3622_v19 }
 0x54a   :  { %2114 = vmatprep.subr.bf16.mxu0 %v3626_v22 }
 0x54b   :  { %2990 = vmatpush3.bf16.msra.mxu1 %v3136_v61 }
 0x54c   :  { %2991 = vmatprep.subr.bf16.mxu1 %v3383_v0 }
 0x54d   :  { %2115 = vmatpush1.bf16.msra.mxu0 %v3629_v48 }
 0x54e   :  { %2116 = vmatprep.subr.bf16.mxu0 %v3633_v33 }
 0x54f   :  { %2992 = vmatpush3.bf16.msra.mxu1 %v3137_v54 }
 0x550   :  { %2993 = vmatprep.subr.bf16.mxu1 %v3383_v0 }
 0x551   :  { %2117 = vmatpush1.bf16.msra.mxu0 %v3636_v34 }
 0x552   :  { %2118 = vmatprep.subr.bf16.mxu0 %v3639_v40 }
 0x553   :  { %2994 = vmatpush3.bf16.msra.mxu1 %v3138_v55  ;;  %v1614_v55 = vld [vmem:[#allocation2 + $0x100] sm:$0xff] }
 0x554   :  { %2995 = vmatprep.subr.bf16.mxu1 %v3383_v0 }
 0x555   :  { %2119 = vmatpush1.bf16.msra.mxu0 %v3642_v35 }
 0x556   :  { %2120 = vmatprep.subr.bf16.mxu0 %v3646_v42 }
 0x557   :  { %2996 = vmatpush3.bf16.msra.mxu1 %v3139_v57 }
 0x558   :  { %2997 = vmatprep.subr.bf16.mxu1 %v3383_v0 }
 0x559   :  { %2121 = vmatpush1.bf16.msra.mxu0 %v3649_v37 }
 0x55a   :  { %2122 = vmatprep.subr.bf16.mxu0 %v3653_v44 }
 0x55b   :  { %2998 = vmatpush3.bf16.msra.mxu1 %v3140_v58 }
 0x55c   :  { %2999 = vmatprep.subr.bf16.mxu1 %v3383_v0 }
 0x55d   :  { %2123 = vmatpush1.bf16.msra.mxu0 %v3656_v45 }
 0x55e   :  { %2124 = vmatprep.subr.bf16.mxu0 %v3660_v47 }
 0x561   :  { %2125 = vmatpush1.bf16.msra.mxu0 %v3663_v49 }
 0x562   :  { %2424 = vmatprep.subr.bf16.mxu0 %v3613_v27  ;;  %v3141_v27 = vld [vmem:[#allocation5 + $0x20] ss:$12 sps:$4 sm:$0xff]  }
 0x563   :  { %3000 = vmatpush3.bf16.msra.mxu1 %v3141_v27 }
 0x564   :  { %3001 = vmatprep.subr.bf16.mxu1 %v3383_v0 }
 0x567   :  { %3002 = vmatpush3.bf16.msra.mxu1 %v3142_v59 }
 0x568   :  { %3007 = vmatprep.subr.bf16.mxu1 %v3383_v0 }
 0x604   :  { %v1830_v62 = vpop.f32.mrf.mxu0  ;;  %v1873_v56 = vpop.f32.mrf.mxu1 }
 0x605   :  { %v1831_v63 = vadd.f32 %v1830_v62, %v1656_v51  ;;  %v1874_v61 = vadd.f32 %v1873_v56, %v1664_v38 }
 0x606   :  { %v1832_v21 = vpop.f32.mrf.mxu0  ;;  %v2985_v10 = vpop.f32.mrf.mxu1 }
 0x607   :  { %v1880_v24 = vadd.f32 %v1831_v63, %v1612_v60  ;;  %v1833_v26 = vadd.f32 %v1832_v21, %v1660_v18  ;;  %v1617_v60 = vld [vmem:[#allocation2 + $0x118] sm:$0xff] }
 0x608   :  { %v1834_v13 = vpop.f32.mrf.mxu0  ;;  %v1876_v25 = vpop.f32.mrf.mxu1 }
 0x609   :  { %v2735_v12 = vmul.f32 -1.442695, %v1880_v24  ;;  %v1835_v29 = vadd.f32 %v1834_v13, %v1656_v51  ;;  %v1894_v8 = vadd.f32 %v1833_v26, %v1613_v30  ;;  %v1877_v59 = vadd.f32 %v1876_v25, %v1664_v38 }
 0x60a   :  { %v1836_v28 = vpop.f32.mrf.mxu0  ;;  %v2986_v3 = vpop.f32.mrf.mxu1 }
 0x60b   :  { %3251 = vpow2.f32 %v2735_v12  ;;  %v1881_v4 = vadd.f32 %v1835_v29, %v1615_v7  ;;  %v1837_v5 = vadd.f32 %v1836_v28, %v1660_v18  ;;  %v2737_v32 = vmul.f32 -1.442695, %v1894_v8  ;;  %v1929_v28 = vld [vmem:[#allocation2 + $0x138] sm:$0xff] }
 0x60d   :  { %v2736_v9 = vmul.f32 -1.442695, %v1881_v4  ;;  %v1895_v14 = vadd.f32 %v1837_v5, %v1616_v11 }
 0x60f   :  { %3253 = vpow2.f32 %v2736_v9  ;;  %v2738_v31 = vmul.f32 -1.442695, %v1895_v14  ;;  %v1927_v9 = vld [vmem:[#allocation2 + $0x128] sm:$0xff] }
 0x610   :  { %3255 = vpow2.f32 %v2737_v32 }
 0x611   :  { %3257 = vpow2.f32 %v2738_v31 }
 0x618   :  { %v3252_v20 = vpop.eup %3251 }
 0x619   :  { %v1888_v6 = vadd.f32 1.0, %v3252_v20 }
 0x61b   :  { %3259 = vrcp.f32 %v1888_v6 }
 0x61c   :  { %v3254_v52 = vpop.eup %3253 }
 0x61d   :  { %v1889_v43 = vadd.f32 1.0, %v3254_v52  ;;  %v3256_v46 = vpop.eup %3255  ;;  %v1930_v52 = vld [vmem:[#allocation2 + $0x140] sm:$0xff] }
 0x61e   :  { %v3258_v53 = vpop.eup %3257  ;;  %v1902_v15 = vadd.f32 1.0, %v3256_v46 }
 0x61f   :  { %3261 = vrcp.f32 %v1889_v43  ;;  %v1903_v57 = vadd.f32 1.0, %v3258_v53 }
 0x620   :  { %3263 = vrcp.f32 %v1902_v15 }
 0x621   :  { %3265 = vrcp.f32 %v1903_v57 }
 0x628   :  { %v3260_v54 = vpop.eup %3259 }
 0x629   :  { %v1908_v58 = vmul.f32 %v3260_v54, %v1874_v61 }
 0x62b   :  { %v1910_v27 = vadd.f32 %v1908_v58, %v1614_v55 }
 0x62c   :  { %v3262_v51 = vpop.eup %3261 }
 0x62d   :  { %3267 = vtanh.f32 %v1910_v27  ;;  %v1909_v62 = vmul.f32 %v3262_v51, %v1877_v59  ;;  %v3264_v18 = vpop.eup %3263 }
 0x62e   :  { %v3266_v21 = vpop.eup %3265  ;;  %v1914_v2 = vsub.f32 1.0, %v3264_v18  ;;  %v1918_v56 = vmul.f32 %v3264_v18, %v3720_v41 }
 0x62f   :  { %v1911_v63 = vadd.f32 %v1909_v62, %v1617_v60  ;;  %v1915_v7 = vsub.f32 1.0, %v3266_v21  ;;  %v1919_v25 = vmul.f32 %v3266_v21, %v3724_v50  ;;  %v1928_v60 = vld [vmem:[#allocation2 + $0x130] sm:$0xff] }
 0x631   :  { %3269 = vtanh.f32 %v1911_v63 }
 0x63a   :  { %v3268_v10 = vpop.eup %3267 }
 0x63b   :  { %v1916_v24 = vmul.f32 %v3268_v10, %v1914_v2  ;;  %v1931_v10 = vld [vmem:[#allocation2 + $0x148] sm:$0xff] }
 0x63d   :  { %v3763_v13 = vadd.f32 %v1918_v56, %v1916_v24 }
 0x63e   :  { %v3270_v12 = vpop.eup %3269 }
 0x63f   :  { %v1917_v26 = vmul.f32 %v3270_v12, %v1915_v7  ;;  %1923 = vst [vmem:[#allocation7 + $0x50] sm:$0xff] %v3763_v13 }
 0x641   :  { %v3767_v29 = vadd.f32 %v1919_v25, %v1917_v26 }
 0x643   :  { %1924 = vst [vmem:[#allocation7 + $0x58] sm:$0xff] %v3767_v29  ;;  %v1932_v30 = vpack.c.bf16 %v3767_v29, %v3763_v13 }
 0x645   :  { %2143 = vmatmul.mubr.bf16.vlgmr.msra.gmra.mxu0 %v1932_v30  ;;  %3004 = vmatmul.mubr.bf16.vlgmr.msra.gmra.mxu1 %v1932_v30 }
 0x646   :  { %2425 = vmatpush1.bf16.msra.mxu0 %v3615_v16  ;;  %2456 = vmatprep.mubr.bf16.mxu0 %v3384_v1  ;;  %v3143_v1 = vld [vmem:[#allocation5 + $0xb0] ss:$12 sps:$4 sm:$0xff]   ;;  %v3144_v16 = vld [vmem:[#allocation5 + $0x98] ss:$12 sps:$4 sm:$0xff]  }
 0x647   :  { %2426 = vmatprep.subr.bf16.mxu0 %v3619_v17  ;;  %3023 = vmatprep.mubr.msk.bf16.mxu1 %vm3385_vm0, %v3383_v0  ;;  %v3145_v17 = vld [vmem:[#allocation5 + $0x80] ss:$12 sps:$4 sm:$0xff]  }
 0x648   :  { %3008 = vmatpush3.bf16.msra.mxu1 %v3143_v1 }
 0x649   :  { %3009 = vmatprep.subr.bf16.mxu1 %v3383_v0 }
 0x64a   :  { %2427 = vmatpush1.bf16.msra.mxu0 %v3622_v19  ;;  %v3146_v19 = vld [vmem:[#allocation5 + $0x68] ss:$12 sps:$4 sm:$0xff]  }
 0x64b   :  { %2428 = vmatprep.subr.bf16.mxu0 %v3626_v22  ;;  %v3147_v22 = vld [vmem:[#allocation5 + $0x50] ss:$12 sps:$4 sm:$0xff]  }
 0x64c   :  { %3010 = vmatpush3.bf16.msra.mxu1 %v3144_v16 }
 0x64d   :  { %3011 = vmatprep.subr.bf16.mxu1 %v3383_v0 }
 0x64e   :  { %2429 = vmatpush1.bf16.msra.mxu0 %v3629_v48  ;;  %v3148_v48 = vld [vmem:[#allocation5 + $0x38] ss:$12 sps:$4 sm:$0xff]  }
 0x64f   :  { %2430 = vmatprep.subr.bf16.mxu0 %v3633_v33  ;;  %v3149_v33 = vld [vmem:[#allocation5 + $0x20] ss:$12 sps:$4 sm:$0xff]  }
 0x650   :  { %3012 = vmatpush3.bf16.msra.mxu1 %v3145_v17 }
 0x651   :  { %3013 = vmatprep.subr.bf16.mxu1 %v3383_v0 }
 0x652   :  { %2431 = vmatpush1.bf16.msra.mxu0 %v3636_v34  ;;  %v3150_v34 = vld [vmem:[#allocation5 + $0x8] ss:$12 sps:$4 sm:$0xff]  }
 0x653   :  { %2432 = vmatprep.subr.bf16.mxu0 %v3639_v40  ;;  %v1965_v40 = vld [vmem:[%s3826_s2] sm:$0x7] }
 0x654   :  { %3014 = vmatpush3.bf16.msra.mxu1 %v3146_v19  ;;  %v1978_v57 = vrot.slane %v1965_v40, %v3514_v23 }
 0x655   :  { %3015 = vmatprep.subr.bf16.mxu1 %v3383_v0 }
 0x656   :  { %2433 = vmatpush1.bf16.msra.mxu0 %v3642_v35  ;;  %v1970_v35 = vrot.slane %v1965_v40, %v3505_v36 }
 0x657   :  { %2434 = vmatprep.subr.bf16.mxu0 %v3646_v42  ;;  %v1926_v42 = vld [vmem:[#allocation2 + $0x120] sm:$0xff] }
 0x658   :  { %3016 = vmatpush3.bf16.msra.mxu1 %v3147_v22 }
 0x659   :  { %3017 = vmatprep.subr.bf16.mxu1 %v3383_v0 }
 0x65a   :  { %2435 = vmatpush1.bf16.msra.mxu0 %v3649_v37 }
 0x65b   :  { %2436 = vmatprep.subr.bf16.mxu0 %v3653_v44 }
 0x65c   :  { %3018 = vmatpush3.bf16.msra.mxu1 %v3148_v48 }
 0x65d   :  { %3019 = vmatprep.subr.bf16.mxu1 %v3383_v0 }
 0x65e   :  { %2437 = vmatpush1.bf16.msra.mxu0 %v3656_v45 }
 0x65f   :  { %2438 = vmatprep.subr.bf16.mxu0 %v3660_v47  ;;  %v1974_v47 = vrot.slane %v1965_v40, %v3511_v39 }
 0x660   :  { %3020 = vmatpush3.bf16.msra.mxu1 %v3149_v33 }
 0x661   :  { %3021 = vmatprep.subr.bf16.mxu1 %v3383_v0 }
 0x662   :  { %2439 = vmatpush1.bf16.msra.mxu0 %v3663_v49 }
 0x664   :  { %3022 = vmatpush3.bf16.msra.mxu1 %v3150_v34 }
 0x705   :  { %v2144_v37 = vpop.f32.mrf.mxu0  ;;  %v2187_v44 = vpop.f32.mrf.mxu1 }
 0x706   :  { %v2145_v45 = vadd.f32 %v2144_v37, %v1970_v35  ;;  %v2188_v59 = vadd.f32 %v2187_v44, %v1978_v57 }
 0x707   :  { %v2146_v49 = vpop.f32.mrf.mxu0  ;;  %v3005_v41 = vpop.f32.mrf.mxu1 }
 0x708   :  { %v2194_v50 = vadd.f32 %v2145_v45, %v1926_v42  ;;  %v2147_v5 = vadd.f32 %v2146_v49, %v1974_v47  ;;  %v2243_v41 = vld [vmem:[#allocation2 + $0x168] sm:$0xff] }
 0x709   :  { %v2148_v3 = vpop.f32.mrf.mxu0  ;;  %v2190_v4 = vpop.f32.mrf.mxu1 }
 0x70a   :  { %v2763_v0 = vmul.f32 -1.442695, %v2194_v50  ;;  %v2149_v8 = vadd.f32 %v2148_v3, %v1970_v35  ;;  %v2208_v20 = vadd.f32 %v2147_v5, %v1927_v9  ;;  %v2191_v21 = vadd.f32 %v2190_v4, %v1978_v57  ;;  %v2240_v35 = vld [vmem:[#allocation2 + $0x150] sm:$0xff]  ;;  %v2241_v5 = vld [vmem:[#allocation2 + $0x158] sm:$0xff] }
 0x70b   :  { %v2150_v11 = vpop.f32.mrf.mxu0  ;;  %v3006_v14 = vpop.f32.mrf.mxu1 }
 0x70c   :  { %3271 = vpow2.f32 %v2763_v0  ;;  %v2195_v32 = vadd.f32 %v2149_v8, %v1929_v28  ;;  %v2151_v31 = vadd.f32 %v2150_v11, %v1974_v47  ;;  %v2765_v46 = vmul.f32 -1.442695, %v2208_v20 }
 0x70e   :  { %v2764_v6 = vmul.f32 -1.442695, %v2195_v32  ;;  %v2209_v43 = vadd.f32 %v2151_v31, %v1930_v52  ;;  %v2244_v31 = vld [vmem:[#allocation2 + $0x170] sm:$0xff] }
 0x710   :  { %3273 = vpow2.f32 %v2764_v6  ;;  %v2766_v38 = vmul.f32 -1.442695, %v2209_v43 }
 0x711   :  { %3275 = vpow2.f32 %v2765_v46 }
 0x712   :  { %3277 = vpow2.f32 %v2766_v38 }
 0x719   :  { %v3272_v53 = vpop.eup %3271 }
 0x71a   :  { %v2202_v15 = vadd.f32 1.0, %v3272_v53 }
 0x71c   :  { %3279 = vrcp.f32 %v2202_v15 }
 0x71d   :  { %v3274_v61 = vpop.eup %3273 }
 0x71e   :  { %v2203_v54 = vadd.f32 1.0, %v3274_v61  ;;  %v3276_v55 = vpop.eup %3275 }
 0x71f   :  { %v3278_v58 = vpop.eup %3277  ;;  %v2216_v27 = vadd.f32 1.0, %v3276_v55 }
 0x720   :  { %3281 = vrcp.f32 %v2203_v54  ;;  %v2217_v62 = vadd.f32 1.0, %v3278_v58  ;;  %v2242_v58 = vld [vmem:[#allocation2 + $0x160] sm:$0xff] }
 0x721   :  { %3283 = vrcp.f32 %v2216_v27 }
 0x722   :  { %3285 = vrcp.f32 %v2217_v62 }
 0x729   :  { %v3280_v51 = vpop.eup %3279 }
 0x72a   :  { %v2222_v63 = vmul.f32 %v3280_v51, %v2188_v59 }
 0x72c   :  { %v2224_v18 = vadd.f32 %v2222_v63, %v1928_v60  ;;  %v2245_v63 = vld [vmem:[#allocation2 + $0x178] sm:$0xff] }
 0x72d   :  { %v3282_v2 = vpop.eup %3281 }
 0x72e   :  { %3287 = vtanh.f32 %v2224_v18  ;;  %v2223_v24 = vmul.f32 %v3282_v2, %v2191_v21  ;;  %v3284_v7 = vpop.eup %3283 }
 0x72f   :  { %v3286_v12 = vpop.eup %3285  ;;  %v2228_v26 = vsub.f32 1.0, %v3284_v7  ;;  %v2232_v1 = vmul.f32 %v3284_v7, %v3763_v13  ;;  %v2279_v13 = vld [vmem:[%s3826_s2] sm:$0x7]  ;;  %s3386_s2 = smov [#allocation7]  }
 0x730   :  { %v2225_v56 = vadd.f32 %v2223_v24, %v1931_v10  ;;  %v2229_v16 = vsub.f32 1.0, %v3286_v12  ;;  %v2233_v48 = vmul.f32 %v3286_v12, %v3767_v29  ;;  %v2284_v40 = vrot.slane %v2279_v13, %v3505_v36  ;;  %s2558_s13 = sshll.u32 %s3386_s2, 4  ;;  %s2559_s13 = int_to_ptr.vmem [resolvable:$true] %s2558_s13 }
 0x731   :  { %v2288_v44 = vrot.slane %v2279_v13, %v3511_v39  ;;  %v2292_v15 = vrot.slane %v2279_v13, %v3514_v23  ;;  %s3351_s14 = scalar_lea.vmem %s2559_s13, 2048  ;;  %p3356_p11 = scmp.lt.s32.totalorder %s2559_s13, %s2559_s13 }
 0x732   :  { %3289 = vtanh.f32 %v2225_v56  ;;  %p3352_p10 = scmp.ne.s32.totalorder %s2559_s13, %s3351_s14  ;;  %p3357_p12 = scmp.lt.s32.totalorder %s3351_s14, %s3351_s14 }
 0x734   :  { %p3358_p13 = por %p3357_p12, %p3356_p11 }
 0x736   :  { %p3359_p0 = pnand %p3358_p13, %p3352_p10 }
 0x73b   :  { %v3288_v25 = vpop.eup %3287 }
 0x73c   :  { %v2230_v30 = vmul.f32 %v3288_v25, %v2228_v26 }
 0x73e   :  { %v3804_v17 = vadd.f32 %v2232_v1, %v2230_v30 }
 0x73f   :  { %v3290_v19 = vpop.eup %3289 }
 0x740   :  { %v2231_v22 = vmul.f32 %v3290_v19, %v2229_v16  ;;  %2237 = vst [vmem:[#allocation7 + $0x60] sm:$0xff] %v3804_v17 }
 0x742   :  { %v3808_v33 = vadd.f32 %v2233_v48, %v2231_v22 }
 0x744   :  { %2238 = vst [vmem:[#allocation7 + $0x68] sm:$0xff] %v3808_v33  ;;  %v2246_v34 = vpack.c.bf16 %v3808_v33, %v3804_v17 }
 0x746   :  { %2457 = vmatmul.mubr.bf16.vlgmr.msra.gmra.mxu0 %v2246_v34  ;;  %3024 = vmatmul.mubr.bf16.vlgmr.msra.gmra.mxu1 %v2246_v34 }
 0x806   :  { %v2458_v42 = vpop.f32.mrf.mxu0  ;;  %v2501_v29 = vpop.f32.mrf.mxu1 }
 0x807   :  { %v2459_v37 = vadd.f32 %v2458_v42, %v2284_v40  ;;  %v2502_v55 = vadd.f32 %v2501_v29, %v2292_v15 }
 0x808   :  { %v2460_v45 = vpop.f32.mrf.mxu0  ;;  %v3025_v47 = vpop.f32.mrf.mxu1 }
 0x809   :  { %v2508_v49 = vadd.f32 %v2459_v37, %v2240_v35  ;;  %v2461_v4 = vadd.f32 %v2460_v45, %v2288_v44 }
 0x80a   :  { %v2462_v50 = vpop.f32.mrf.mxu0  ;;  %v2504_v28 = vpop.f32.mrf.mxu1 }
 0x80b   :  { %v2791_v3 = vmul.f32 -1.442695, %v2508_v49  ;;  %v2463_v0 = vadd.f32 %v2462_v50, %v2284_v40  ;;  %v2522_v14 = vadd.f32 %v2461_v4, %v2241_v5  ;;  %v2505_v60 = vadd.f32 %v2504_v28, %v2292_v15 }
 0x80c   :  { %v2464_v8 = vpop.f32.mrf.mxu0  ;;  %v3026_v9 = vpop.f32.mrf.mxu1 }
 0x80d   :  { %3291 = vpow2.f32 %v2791_v3  ;;  %v2509_v36 = vadd.f32 %v2463_v0, %v2243_v41  ;;  %v2465_v11 = vadd.f32 %v2464_v8, %v2288_v44  ;;  %v2793_v20 = vmul.f32 -1.442695, %v2522_v14 }
 0x80f   :  { %v2792_v32 = vmul.f32 -1.442695, %v2509_v36  ;;  %v2523_v39 = vadd.f32 %v2465_v11, %v2244_v31 }
 0x811   :  { %3293 = vpow2.f32 %v2792_v32  ;;  %v2794_v6 = vmul.f32 -1.442695, %v2523_v39 }
 0x812   :  { %3295 = vpow2.f32 %v2793_v20 }
 0x813   :  { %3297 = vpow2.f32 %v2794_v6 }
 0x81a   :  { %v3292_v52 = vpop.eup %3291 }
 0x81b   :  { %v2516_v43 = vadd.f32 1.0, %v3292_v52 }
 0x81d   :  { %3299 = vrcp.f32 %v2516_v43 }
 0x81e   :  { %v3294_v46 = vpop.eup %3293 }
 0x81f   :  { %v2517_v38 = vadd.f32 1.0, %v3294_v46  ;;  %v3296_v53 = vpop.eup %3295 }
 0x820   :  { %v3298_v61 = vpop.eup %3297  ;;  %v2530_v54 = vadd.f32 1.0, %v3296_v53 }
 0x821   :  { %3301 = vrcp.f32 %v2517_v38  ;;  %v2531_v27 = vadd.f32 1.0, %v3298_v61 }
 0x822   :  { %3303 = vrcp.f32 %v2530_v54 }
 0x823   :  { %3305 = vrcp.f32 %v2531_v27 }
 0x82a   :  { %v3300_v57 = vpop.eup %3299 }
 0x82b   :  { %v2536_v59 = vmul.f32 %v3300_v57, %v2502_v55 }
 0x82d   :  { %v2538_v51 = vadd.f32 %v2536_v59, %v2242_v58 }
 0x82e   :  { %v3302_v62 = vpop.eup %3301 }
 0x82f   :  { %3307 = vtanh.f32 %v2538_v51  ;;  %v2537_v18 = vmul.f32 %v3302_v62, %v2505_v60  ;;  %v3304_v2 = vpop.eup %3303 }
 0x830   :  { %v3306_v10 = vpop.eup %3305  ;;  %v2542_v23 = vsub.f32 1.0, %v3304_v2  ;;  %v2546_v7 = vmul.f32 %v3304_v2, %v3804_v17 }
 0x831   :  { %v2539_v21 = vadd.f32 %v2537_v18, %v2245_v63  ;;  %v2543_v26 = vsub.f32 1.0, %v3306_v10  ;;  %v2547_v1 = vmul.f32 %v3306_v10, %v3808_v33 }
 0x833   :  { %3309 = vtanh.f32 %v2539_v21 }
 0x83c   :  { %v3308_v24 = vpop.eup %3307 }
 0x83d   :  { %v2544_v56 = vmul.f32 %v3308_v24, %v2542_v23 }
 0x83f   :  { %v2548_v12 = vadd.f32 %v2546_v7, %v2544_v56 }
 0x840   :  { %v3310_v25 = vpop.eup %3309 }
 0x841   :  { %2551 = vst [vmem:[#allocation7 + $0x70] sm:$0xff] %v2548_v12  ;;  %v2545_v30 = vmul.f32 %v3310_v25, %v2543_v26 }
 0x843   :  { %v2549_v16 = vadd.f32 %v2547_v1, %v2545_v30 }
 0x845   :  { %2552 = vst [vmem:[#allocation7 + $0x78] sm:$0xff] %v2549_v16 }
 0x846   :  { %3362 = shalt.err (!%p3359_p0)
}
 0x847   :  { %s3387_s15 = smov 128   ;;  %s3388_s16 = smov 8  }
 0x848   :  { %2564 = dma.vmem_to_hbm [thread:$0]  %s2559_s13, 2048, %s3827_s3, [#allocation4], %s3387_s15, %s3387_s15, %s3388_s16  }
 0x849   :  { %3375 = dma.done.wait [#allocation4], 2048  }
 0x84a   :  { %3376 = vsyncadd [#allocation4], 4294965248 }
 0x84b   :  { %2568 = vsyncpa [#allocation3], 1 }
 0x84c   :  { %2569 = vsyncpa [#allocation6], 1 }
 0x84d   :  { %2570 = vsyncpa [#allocation4], 1 }

</bundles_post_ra>
